<compile_context>
chip_gen: v5e
topology: v5e:2x2
jax: 0.10.0
libtpu: 0.0.40
codegen_flags: <defaults>
</compile_context>

<pallas_src>
import functools

import jax
import jax.numpy as jnp
from jax.experimental import pallas as pl
from jax.experimental.pallas import tpu as pltpu

VMEM_SPEC = pl.BlockSpec(memory_space=pltpu.MemorySpace.VMEM)
SMEM_SPEC = pl.BlockSpec(memory_space=pltpu.MemorySpace.SMEM)
OUT_LANES = 128  # lane-dense width of the classifier output slab


def _round_up(n, m):
    return -(-n // m) * m


# ----------------------------------------------------------------------------
# Single fused kernel: encoders + 4x GATConv + classifier
# ----------------------------------------------------------------------------
def _fused_forward_kernel(
        xi_ref, wti_ref, addi_ref,                   # institution encoder
        xs_ref, wts_ref, adds_ref,                   # supplier encoder
        adj_ref, adjt_ref,                           # edge mask + its transpose
        rhs_i1_ref, rhs_s1_ref, b1r_ref, b1v_ref,    # layer-1 fused weights/bias
        rhs_i2_ref, rhs_s2_ref, b2r_ref, b2v_ref,    # layer-2 fused weights/bias
        idxi_ref, idxs_ref,                          # classifier indices (SMEM)
        out_ref,                                     # (E_pad, 128) output slab
        xs1_scr, xi1_scr, xs2_scr, xi2_scr, prod_scr,
        *, heads, out_ch, n_lab):
    f32 = jnp.float32
    HC = heads * out_ch

    # ---- node-type encoders: Linear(x) + (bias + Embedding) pre-summed -----
    xi = jnp.dot(xi_ref[...], wti_ref[...], preferred_element_type=f32) + addi_ref[...]
    xs = jnp.dot(xs_ref[...], wts_ref[...], preferred_element_type=f32) + adds_ref[...]

    adj = adj_ref[...]            # [Ns_pad, Ni_pad]; adj[d, s] = 1 iff inst s -> supp d
    adjt = adjt_ref[...]          # [Ni_pad, Ns_pad]
    nbias = (adj - 1.0) * 1e9     # 0 on edges, -1e9 on non-edges (reused by both layers)
    nbias_t = (adjt - 1.0) * 1e9

    def gat(f_src, f_dst, mask, mbias, bias_ref, out_scr, relu):
        """Dense multi-head GATConv (concat=True, negative_slope=0.2).

        f_src/f_dst: fused projections [N, >=HC+2*heads]
          cols [0,HC)           -> lin(x) for this node type as SOURCE
          cols [HC,HC+heads)    -> folded att_src logits (this type as SOURCE)
          cols [HC+h,HC+2h)     -> folded att_dst logits (this type as DEST)
        mask: [Nd, Ns] 0/1; mbias: additive -1e9 mask; writes [Nd, HC] slab.
        """
        a_src = f_src[:, HC:HC + heads]                  # [Ns, H]
        a_dst = f_dst[:, HC + heads:HC + 2 * heads]      # [Nd, H]
        # all-head attention logits in one slab: [H, Nd, Ns]
        e = a_dst.T[:, :, None] + a_src.T[:, None, :]
        e = jnp.maximum(e, 0.2 * e) + mbias              # LeakyReLU(0.2) + mask bias
        m = jnp.max(e, axis=-1, keepdims=True)
        p = jnp.exp(e - m) * mask                        # exact zeros on non-edges
        s = jnp.sum(p, axis=-1, keepdims=True)
        alpha = p * pl.reciprocal(jnp.maximum(s, 1e-16), approx=True)
        bias = bias_ref[...]
        for h in range(heads):                           # heads small: static unroll
            lo, hi = h * out_ch, (h + 1) * out_ch
            o = jnp.dot(alpha[h], f_src[:, lo:hi],
                        preferred_element_type=f32) + bias[:, lo:hi]
            if relu:
                o = jnp.maximum(o, 0.0)
            out_scr[:, lo:hi] = o                        # direct column-slice store

    # ---- hetero GNN layer 1 (ReLU fused; dropout = identity in eval) -------
    fi1 = jnp.dot(xi, rhs_i1_ref[...], preferred_element_type=f32)   # [Ni, 128]
    fs1 = jnp.dot(xs, rhs_s1_ref[...], preferred_element_type=f32)   # [Ns, 128]
    gat(fi1, fs1, adj, nbias, b1r_ref, xs1_scr, True)     # 'rates':     inst -> supp
    gat(fs1, fi1, adjt, nbias_t, b1v_ref, xi1_scr, True)  # 'rev_rates': supp -> inst

    # ---- hetero GNN layer 2 -------------------------------------------------
    fi2 = jnp.dot(xi1_scr[...], rhs_i2_ref[...], preferred_element_type=f32)
    fs2 = jnp.dot(xs1_scr[...], rhs_s2_ref[...], preferred_element_type=f32)
    gat(fi2, fs2, adj, nbias, b2r_ref, xs2_scr, False)
    gat(fs2, fi2, adjt, nbias_t, b2v_ref, xi2_scr, False)

    # ---- classifier: SMEM-index row gather, fused elementwise product ------
    for e_ in range(n_lab):
        ii = idxi_ref[e_]
        si = idxs_ref[e_]
        prod_scr[pl.ds(e_, 1), :] = (xi2_scr[pl.ds(ii, 1), :] *
                                     xs2_scr[pl.ds(si, 1), :])
    pred = jax.nn.sigmoid(jnp.sum(prod_scr[...], axis=-1, keepdims=True))  # [Ep,1]
    # Lane-dense output slab: broadcast along 128 lanes; column 0 used outside.
    out_ref[...] = jnp.broadcast_to(pred, (pred.shape[0], OUT_LANES))


# ----------------------------------------------------------------------------
# Parameters (deterministic, shapes follow the torch module __init__)
# ----------------------------------------------------------------------------
def init_params(key, hidden, heads, n_inst, n_supp, inst_feat=25, supp_feat=25):
    ks = iter(jax.random.split(key, 32))

    def nrm(shape, scale=0.1):
        return (scale * jax.random.normal(next(ks), shape)).astype(jnp.float32)

    def gat_params(fin, c, h):
        # (lin weight [h*c, fin], att_src [h, c], att_dst [h, c], bias [h*c])
        return (nrm((h * c, fin)), nrm((h, c)), nrm((h, c)), nrm((h * c,)))

    return {
        "inst_lin_w": nrm((hidden, inst_feat)), "inst_lin_b": nrm((hidden,)),
        "supp_lin_w": nrm((hidden, supp_feat)), "supp_lin_b": nrm((hidden,)),
        "inst_emb": nrm((n_inst, hidden)), "supp_emb": nrm((n_supp, hidden)),
        # to_hetero duplicates each GATConv per edge type:
        "gat1_rates": gat_params(hidden, hidden, heads),          # inst -> supp
        "gat1_rev":   gat_params(hidden, hidden, heads),          # supp -> inst
        "gat2_rates": gat_params(hidden * heads, hidden, heads),  # inst -> supp
        "gat2_rev":   gat_params(hidden * heads, hidden, heads),  # supp -> inst
    }


# ----------------------------------------------------------------------------
# Full Model forward (single fused pallas_call)
# ----------------------------------------------------------------------------
def model_forward(params, x_inst, x_supp, node_id_inst, node_id_supp,
                  edge_index, edge_label_index, *, hidden, heads):
    f32 = jnp.float32
    n_inst, n_supp = x_inst.shape[0], x_supp.shape[0]
    ni_p, ns_p = _round_up(n_inst, 8), _round_up(n_supp, 8)
    HC = heads * hidden

    # --- Embedding gather + linear-bias fold (tiny XLA glue feeding the kernel)
    add_i = jnp.take(params["inst_emb"], node_id_inst, axis=0) + params["inst_lin_b"][None, :]
    add_s = jnp.take(params["supp_emb"], node_id_supp, axis=0) + params["supp_lin_b"][None, :]
    add_i = jnp.pad(add_i.astype(f32), ((0, ni_p - n_inst), (0, 0)))
    add_s = jnp.pad(add_s.astype(f32), ((0, ns_p - n_supp), (0, 0)))

    # --- zero-pad node rows (->x8) and raw feature dim (25 -> 32) ------------
    def pad_feat(x, n_pad):
        f = x.shape[1]
        fp = _round_up(f, 8)
        return jnp.pad(x.astype(f32), ((0, n_pad - x.shape[0]), (0, fp - f)))

    xi_p = pad_feat(x_inst, ni_p)
    xs_p = pad_feat(x_supp, ns_p)
    wti = jnp.pad(params["inst_lin_w"].T.astype(f32),
                  ((0, xi_p.shape[1] - params["inst_lin_w"].shape[1]), (0, 0)))
    wts = jnp.pad(params["supp_lin_w"].T.astype(f32),
                  ((0, xs_p.shape[1] - params["supp_lin_w"].shape[1]), (0, 0)))

    # --- dense adjacency (adj[supp_dst, inst_src]=1) and host-side transpose -
    adj = jnp.zeros((ns_p, ni_p), f32).at[edge_index[1], edge_index[0]].set(1.0)
    adj_t = adj.T

    # --- fused per-node-type RHS slab: [ lin | att_src-fold | att_dst-fold ] -
    def fuse(gat_src, gat_dst):
        w_s, att_src, _, _ = gat_src            # conv where this type is SOURCE
        w_d, _, att_dst, _ = gat_dst            # conv where this type is DEST
        wt = w_s.T.astype(f32)                                       # [Fin, HC]
        wsrc = jnp.einsum("fhc,hc->fh",
                          wt.reshape(wt.shape[0], heads, hidden), att_src)
        wt_d = w_d.T.astype(f32)
        wdst = jnp.einsum("fhc,hc->fh",
                          wt_d.reshape(wt_d.shape[0], heads, hidden), att_dst)
        fused = jnp.concatenate([wt, wsrc, wdst], axis=1)            # [Fin, HC+2H]
        pad = _round_up(fused.shape[1], 128) - fused.shape[1]
        return jnp.pad(fused, ((0, 0), (0, pad)))                    # [Fin, 128k]

    rhs_i1 = fuse(params["gat1_rates"], params["gat1_rev"])
    rhs_s1 = fuse(params["gat1_rev"], params["gat1_rates"])
    rhs_i2 = fuse(params["gat2_rates"], params["gat2_rev"])
    rhs_s2 = fuse(params["gat2_rev"], params["gat2_rates"])
    b1r = params["gat1_rates"][3].reshape(1, -1).astype(f32)
    b1v = params["gat1_rev"][3].reshape(1, -1).astype(f32)
    b2r = params["gat2_rates"][3].reshape(1, -1).astype(f32)
    b2v = params["gat2_rev"][3].reshape(1, -1).astype(f32)

    # --- classifier endpoint indices go to SMEM (no O(E x N) one-hots) -------
    n_lab = edge_label_index.shape[1]
    n_lab_p = _round_up(n_lab, 8)
    idx_i = jnp.pad(edge_label_index[0].astype(jnp.int32), (0, n_lab_p - n_lab))
    idx_s = jnp.pad(edge_label_index[1].astype(jnp.int32), (0, n_lab_p - n_lab))

    kern = functools.partial(_fused_forward_kernel, heads=heads, out_ch=hidden,
                             n_lab=n_lab_p)

    vmem_inputs = (xi_p, wti, add_i, xs_p, wts, add_s, adj, adj_t,
                   rhs_i1, rhs_s1, b1r, b1v, rhs_i2, rhs_s2, b2r, b2v)
    scratch = [pltpu.VMEM((ns_p, HC), f32), pltpu.VMEM((ni_p, HC), f32),
               pltpu.VMEM((ns_p, HC), f32), pltpu.VMEM((ni_p, HC), f32),
               pltpu.VMEM((n_lab_p, HC), f32)]
    # resident footprint estimate (bytes): inputs + scratch + output + logit temps
    footprint = 4 * (sum(int(a.size) for a in vmem_inputs)
                     + (2 * ns_p + 2 * ni_p + n_lab_p) * HC
                     + n_lab_p * OUT_LANES
                     + 4 * heads * ns_p * ni_p)
    vmem_limit = int(min(max(4 * footprint, 16 << 20), 48 << 20))  # v7x-safe clamp

    out = pl.pallas_call(
        kern,
        out_shape=jax.ShapeDtypeStruct((n_lab_p, OUT_LANES), f32),
        in_specs=[VMEM_SPEC] * 16 + [SMEM_SPEC, SMEM_SPEC],
        out_specs=VMEM_SPEC,
        scratch_shapes=scratch,
        compiler_params=pltpu.CompilerParams(vmem_limit_bytes=vmem_limit),
    )(xi_p, wti, add_i, xs_p, wts, add_s, adj, adj_t,
      rhs_i1, rhs_s1, b1r, b1v, rhs_i2, rhs_s2, b2r, b2v,
      idx_i, idx_s)

    return out[:n_lab, 0]


# ----------------------------------------------------------------------------
if __name__ == "__main__":
    HIDDEN = 32      # hidden_channels
    HEADS = 2        # num_heads
    N_INST = 16
    N_SUPP = 12
    N_EDGES = 24
    N_LABEL = 8

    key = jax.random.PRNGKey(0)
    k_par, k_xi, k_xs, k_e0, k_e1, k_l0, k_l1 = jax.random.split(key, 7)

    params = init_params(k_par, HIDDEN, HEADS, N_INST, N_SUPP)

    x_inst = jax.random.normal(k_xi, (N_INST, 25), jnp.float32)
    x_supp = jax.random.normal(k_xs, (N_SUPP, 25), jnp.float32)
    node_id_inst = jnp.arange(N_INST, dtype=jnp.int32)
    node_id_supp = jnp.arange(N_SUPP, dtype=jnp.int32)

    edge_index = jnp.stack([
        jax.random.randint(k_e0, (N_EDGES,), 0, N_INST),
        jax.random.randint(k_e1, (N_EDGES,), 0, N_SUPP),
    ]).astype(jnp.int32)
    edge_label_index = jnp.stack([
        jax.random.randint(k_l0, (N_LABEL,), 0, N_INST),
        jax.random.randint(k_l1, (N_LABEL,), 0, N_SUPP),
    ]).astype(jnp.int32)

    fwd = jax.jit(functools.partial(model_forward, hidden=HIDDEN, heads=HEADS))
    pred = fwd(params, x_inst, x_supp, node_id_inst, node_id_supp,
               edge_index, edge_label_index)
    pred = jax.block_until_ready(pred)

    assert pred.shape == (N_LABEL,)
    assert bool(jnp.all(jnp.isfinite(pred)))
    assert bool(jnp.all((pred >= 0.0) & (pred <= 1.0)))
    print("KERNEL_OK")
</pallas_src>

<mosaic_0001>
module attributes {stable_mosaic.version = 11 : i64} {
  func.func @_fused_forward_kernel(%arg0: memref<16x32xf32, #tpu.memory_space<vmem>>, %arg1: memref<32x32xf32, #tpu.memory_space<vmem>>, %arg2: memref<16x32xf32, #tpu.memory_space<vmem>>, %arg3: memref<16x32xf32, #tpu.memory_space<vmem>>, %arg4: memref<32x32xf32, #tpu.memory_space<vmem>>, %arg5: memref<16x32xf32, #tpu.memory_space<vmem>>, %arg6: memref<16x16xf32, #tpu.memory_space<vmem>>, %arg7: memref<16x16xf32, #tpu.memory_space<vmem>>, %arg8: memref<32x128xf32, #tpu.memory_space<vmem>>, %arg9: memref<32x128xf32, #tpu.memory_space<vmem>>, %arg10: memref<1x64xf32, #tpu.memory_space<vmem>>, %arg11: memref<1x64xf32, #tpu.memory_space<vmem>>, %arg12: memref<64x128xf32, #tpu.memory_space<vmem>>, %arg13: memref<64x128xf32, #tpu.memory_space<vmem>>, %arg14: memref<1x64xf32, #tpu.memory_space<vmem>>, %arg15: memref<1x64xf32, #tpu.memory_space<vmem>>, %arg16: memref<8xi32, #tpu.memory_space<smem>>, %arg17: memref<8xi32, #tpu.memory_space<smem>>, %arg18: memref<8x128xf32, #tpu.memory_space<vmem>>, %arg19: memref<16x64xf32, #tpu.memory_space<vmem>>, %arg20: memref<16x64xf32, #tpu.memory_space<vmem>>, %arg21: memref<16x64xf32, #tpu.memory_space<vmem>>, %arg22: memref<16x64xf32, #tpu.memory_space<vmem>>, %arg23: memref<8x64xf32, #tpu.memory_space<vmem>>) attributes {dimension_semantics = [], scalar_prefetch = 0 : i64, scratch_operands = 5 : i64, tpu.core_type = #tpu.core_type<tc>} {
    %c0 = arith.constant 0 : index
    %c0_0 = arith.constant 0 : index
    %0 = vector.load %arg0[%c0, %c0_0] : memref<16x32xf32, #tpu.memory_space<vmem>>, vector<16x32xf32>
    %c0_1 = arith.constant 0 : index
    %c0_2 = arith.constant 0 : index
    %1 = vector.load %arg1[%c0_1, %c0_2] : memref<32x32xf32, #tpu.memory_space<vmem>>, vector<32x32xf32>
    %cst = arith.constant dense<0.000000e+00> : vector<16x32xf32>
    %2 = tpu.matmul %0, %1, %cst {dimension_numbers = #tpu.dot_dimension_numbers<[1], [0], [0], [1], [0, 0, 1, 1], [], []>} : vector<16x32xf32>, vector<32x32xf32>, vector<16x32xf32> -> vector<16x32xf32>
    %c0_3 = arith.constant 0 : index
    %c0_4 = arith.constant 0 : index
    %3 = vector.load %arg2[%c0_3, %c0_4] : memref<16x32xf32, #tpu.memory_space<vmem>>, vector<16x32xf32>
    %4 = arith.addf %2, %3 : vector<16x32xf32>
    %c0_5 = arith.constant 0 : index
    %c0_6 = arith.constant 0 : index
    %5 = vector.load %arg3[%c0_5, %c0_6] : memref<16x32xf32, #tpu.memory_space<vmem>>, vector<16x32xf32>
    %c0_7 = arith.constant 0 : index
    %c0_8 = arith.constant 0 : index
    %6 = vector.load %arg4[%c0_7, %c0_8] : memref<32x32xf32, #tpu.memory_space<vmem>>, vector<32x32xf32>
    %cst_9 = arith.constant dense<0.000000e+00> : vector<16x32xf32>
    %7 = tpu.matmul %5, %6, %cst_9 {dimension_numbers = #tpu.dot_dimension_numbers<[1], [0], [0], [1], [0, 0, 1, 1], [], []>} : vector<16x32xf32>, vector<32x32xf32>, vector<16x32xf32> -> vector<16x32xf32>
    %c0_10 = arith.constant 0 : index
    %c0_11 = arith.constant 0 : index
    %8 = vector.load %arg5[%c0_10, %c0_11] : memref<16x32xf32, #tpu.memory_space<vmem>>, vector<16x32xf32>
    %9 = arith.addf %7, %8 : vector<16x32xf32>
    %c0_12 = arith.constant 0 : index
    %c0_13 = arith.constant 0 : index
    %10 = vector.load %arg6[%c0_12, %c0_13] : memref<16x16xf32, #tpu.memory_space<vmem>>, vector<16x16xf32>
    %c0_14 = arith.constant 0 : index
    %c0_15 = arith.constant 0 : index
    %11 = vector.load %arg7[%c0_14, %c0_15] : memref<16x16xf32, #tpu.memory_space<vmem>>, vector<16x16xf32>
    %cst_16 = arith.constant 1.000000e+00 : f32
    %12 = vector.broadcast %cst_16 : f32 to vector<16x16xf32>
    %13 = arith.subf %10, %12 : vector<16x16xf32>
    %cst_17 = arith.constant 1.000000e+09 : f32
    %14 = vector.broadcast %cst_17 : f32 to vector<16x16xf32>
    %15 = arith.mulf %13, %14 : vector<16x16xf32>
    %cst_18 = arith.constant 1.000000e+00 : f32
    %16 = vector.broadcast %cst_18 : f32 to vector<16x16xf32>
    %17 = arith.subf %11, %16 : vector<16x16xf32>
    %cst_19 = arith.constant 1.000000e+09 : f32
    %18 = vector.broadcast %cst_19 : f32 to vector<16x16xf32>
    %19 = arith.mulf %17, %18 : vector<16x16xf32>
    %c0_20 = arith.constant 0 : index
    %c0_21 = arith.constant 0 : index
    %20 = vector.load %arg8[%c0_20, %c0_21] : memref<32x128xf32, #tpu.memory_space<vmem>>, vector<32x128xf32>
    %cst_22 = arith.constant dense<0.000000e+00> : vector<16x128xf32>
    %21 = tpu.matmul %4, %20, %cst_22 {dimension_numbers = #tpu.dot_dimension_numbers<[1], [0], [0], [1], [0, 0, 1, 1], [], []>} : vector<16x32xf32>, vector<32x128xf32>, vector<16x128xf32> -> vector<16x128xf32>
    %c0_23 = arith.constant 0 : index
    %c0_24 = arith.constant 0 : index
    %22 = vector.load %arg9[%c0_23, %c0_24] : memref<32x128xf32, #tpu.memory_space<vmem>>, vector<32x128xf32>
    %cst_25 = arith.constant dense<0.000000e+00> : vector<16x128xf32>
    %23 = tpu.matmul %9, %22, %cst_25 {dimension_numbers = #tpu.dot_dimension_numbers<[1], [0], [0], [1], [0, 0, 1, 1], [], []>} : vector<16x32xf32>, vector<32x128xf32>, vector<16x128xf32> -> vector<16x128xf32>
    %24 = vector.extract_strided_slice %21 {offsets = [0, 64], sizes = [16, 2], strides = [1, 1]} : vector<16x128xf32> to vector<16x2xf32>
    %25 = vector.extract_strided_slice %23 {offsets = [0, 66], sizes = [16, 2], strides = [1, 1]} : vector<16x128xf32> to vector<16x2xf32>
    %26 = tpu.transpose %25, [1, 0] : vector<16x2xf32> -> vector<2x16xf32>
    %27 = vector.shape_cast %26 : vector<2x16xf32> to vector<2x16x1xf32>
    %28 = tpu.transpose %24, [1, 0] : vector<16x2xf32> -> vector<2x16xf32>
    %29 = vector.shape_cast %28 : vector<2x16xf32> to vector<2x1x16xf32>
    %30 = vector.broadcast %27 : vector<2x16x1xf32> to vector<2x16x16xf32>
    %31 = vector.broadcast %29 : vector<2x1x16xf32> to vector<2x16x16xf32>
    %32 = arith.addf %30, %31 : vector<2x16x16xf32>
    %cst_26 = arith.constant 2.000000e-01 : f32
    %33 = vector.broadcast %cst_26 : f32 to vector<2x16x16xf32>
    %34 = arith.mulf %33, %32 : vector<2x16x16xf32>
    %35 = arith.maximumf %32, %34 : vector<2x16x16xf32>
    %36 = vector.shape_cast %15 : vector<16x16xf32> to vector<1x16x16xf32>
    %37 = vector.broadcast %36 : vector<1x16x16xf32> to vector<2x16x16xf32>
    %38 = arith.addf %35, %37 : vector<2x16x16xf32>
    %cst_27 = arith.constant dense<0xFF800000> : vector<2x16xf32>
    %39 = vector.multi_reduction <maximumf>, %38, %cst_27 [2] : vector<2x16x16xf32> to vector<2x16xf32>
    %40 = vector.shape_cast %39 : vector<2x16xf32> to vector<2x16x1xf32>
    %41 = vector.broadcast %40 : vector<2x16x1xf32> to vector<2x16x16xf32>
    %42 = arith.subf %38, %41 : vector<2x16x16xf32>
    %43 = math.exp %42 : vector<2x16x16xf32>
    %44 = vector.shape_cast %10 : vector<16x16xf32> to vector<1x16x16xf32>
    %45 = vector.broadcast %44 : vector<1x16x16xf32> to vector<2x16x16xf32>
    %46 = arith.mulf %43, %45 : vector<2x16x16xf32>
    %cst_28 = arith.constant dense<0.000000e+00> : vector<2x16xf32>
    %47 = vector.multi_reduction <add>, %46, %cst_28 [2] : vector<2x16x16xf32> to vector<2x16xf32>
    %48 = vector.shape_cast %47 : vector<2x16xf32> to vector<2x16x1xf32>
    %cst_29 = arith.constant 1.000000e-16 : f32
    %49 = vector.broadcast %cst_29 : f32 to vector<2x16x1xf32>
    %50 = arith.maximumf %48, %49 : vector<2x16x1xf32>
    %51 = tpu.reciprocal %50 {approx = true} : vector<2x16x1xf32> -> vector<2x16x1xf32>
    %52 = vector.broadcast %51 : vector<2x16x1xf32> to vector<2x16x16xf32>
    %53 = arith.mulf %46, %52 : vector<2x16x16xf32>
    %c0_30 = arith.constant 0 : index
    %c0_31 = arith.constant 0 : index
    %54 = vector.load %arg10[%c0_30, %c0_31] : memref<1x64xf32, #tpu.memory_space<vmem>>, vector<1x64xf32>
    %55 = vector.extract_strided_slice %53 {offsets = [0, 0, 0], sizes = [1, 16, 16], strides = [1, 1, 1]} : vector<2x16x16xf32> to vector<1x16x16xf32>
    %56 = vector.shape_cast %55 : vector<1x16x16xf32> to vector<16x16xf32>
    %57 = vector.extract_strided_slice %21 {offsets = [0, 0], sizes = [16, 32], strides = [1, 1]} : vector<16x128xf32> to vector<16x32xf32>
    %cst_32 = arith.constant dense<0.000000e+00> : vector<16x32xf32>
    %58 = tpu.matmul %56, %57, %cst_32 {dimension_numbers = #tpu.dot_dimension_numbers<[1], [0], [0], [1], [0, 0, 1, 1], [], []>} : vector<16x16xf32>, vector<16x32xf32>, vector<16x32xf32> -> vector<16x32xf32>
    %59 = vector.extract_strided_slice %54 {offsets = [0, 0], sizes = [1, 32], strides = [1, 1]} : vector<1x64xf32> to vector<1x32xf32>
    %60 = vector.broadcast %59 : vector<1x32xf32> to vector<16x32xf32>
    %61 = arith.addf %58, %60 : vector<16x32xf32>
    %cst_33 = arith.constant 0.000000e+00 : f32
    %62 = vector.broadcast %cst_33 : f32 to vector<16x32xf32>
    %63 = arith.maximumf %61, %62 : vector<16x32xf32>
    %c0_34 = arith.constant 0 : index
    %c0_35 = arith.constant 0 : index
    %64 = vector.load %arg19[%c0_34, %c0_35] : memref<16x64xf32, #tpu.memory_space<vmem>>, vector<16x32xf32>
    tpu.vector_store %arg19[%c0_34, %c0_35], %63 {strides = array<i32>} : memref<16x64xf32, #tpu.memory_space<vmem>>, vector<16x32xf32>,
    %65 = vector.extract_strided_slice %53 {offsets = [1, 0, 0], sizes = [1, 16, 16], strides = [1, 1, 1]} : vector<2x16x16xf32> to vector<1x16x16xf32>
    %66 = vector.shape_cast %65 : vector<1x16x16xf32> to vector<16x16xf32>
    %67 = vector.extract_strided_slice %21 {offsets = [0, 32], sizes = [16, 32], strides = [1, 1]} : vector<16x128xf32> to vector<16x32xf32>
    %cst_36 = arith.constant dense<0.000000e+00> : vector<16x32xf32>
    %68 = tpu.matmul %66, %67, %cst_36 {dimension_numbers = #tpu.dot_dimension_numbers<[1], [0], [0], [1], [0, 0, 1, 1], [], []>} : vector<16x16xf32>, vector<16x32xf32>, vector<16x32xf32> -> vector<16x32xf32>
    %69 = vector.extract_strided_slice %54 {offsets = [0, 32], sizes = [1, 32], strides = [1, 1]} : vector<1x64xf32> to vector<1x32xf32>
    %70 = vector.broadcast %69 : vector<1x32xf32> to vector<16x32xf32>
    %71 = arith.addf %68, %70 : vector<16x32xf32>
    %cst_37 = arith.constant 0.000000e+00 : f32
    %72 = vector.broadcast %cst_37 : f32 to vector<16x32xf32>
    %73 = arith.maximumf %71, %72 : vector<16x32xf32>
    %c0_38 = arith.constant 0 : index
    %c32 = arith.constant 32 : index
    %74 = vector.load %arg19[%c0_38, %c32] : memref<16x64xf32, #tpu.memory_space<vmem>>, vector<16x32xf32>
    tpu.vector_store %arg19[%c0_38, %c32], %73 {strides = array<i32>} : memref<16x64xf32, #tpu.memory_space<vmem>>, vector<16x32xf32>,
    %75 = vector.extract_strided_slice %23 {offsets = [0, 64], sizes = [16, 2], strides = [1, 1]} : vector<16x128xf32> to vector<16x2xf32>
    %76 = vector.extract_strided_slice %21 {offsets = [0, 66], sizes = [16, 2], strides = [1, 1]} : vector<16x128xf32> to vector<16x2xf32>
    %77 = tpu.transpose %76, [1, 0] : vector<16x2xf32> -> vector<2x16xf32>
    %78 = vector.shape_cast %77 : vector<2x16xf32> to vector<2x16x1xf32>
    %79 = tpu.transpose %75, [1, 0] : vector<16x2xf32> -> vector<2x16xf32>
    %80 = vector.shape_cast %79 : vector<2x16xf32> to vector<2x1x16xf32>
    %81 = vector.broadcast %78 : vector<2x16x1xf32> to vector<2x16x16xf32>
    %82 = vector.broadcast %80 : vector<2x1x16xf32> to vector<2x16x16xf32>
    %83 = arith.addf %81, %82 : vector<2x16x16xf32>
    %cst_39 = arith.constant 2.000000e-01 : f32
    %84 = vector.broadcast %cst_39 : f32 to vector<2x16x16xf32>
    %85 = arith.mulf %84, %83 : vector<2x16x16xf32>
    %86 = arith.maximumf %83, %85 : vector<2x16x16xf32>
    %87 = vector.shape_cast %19 : vector<16x16xf32> to vector<1x16x16xf32>
    %88 = vector.broadcast %87 : vector<1x16x16xf32> to vector<2x16x16xf32>
    %89 = arith.addf %86, %88 : vector<2x16x16xf32>
    %cst_40 = arith.constant dense<0xFF800000> : vector<2x16xf32>
    %90 = vector.multi_reduction <maximumf>, %89, %cst_40 [2] : vector<2x16x16xf32> to vector<2x16xf32>
    %91 = vector.shape_cast %90 : vector<2x16xf32> to vector<2x16x1xf32>
    %92 = vector.broadcast %91 : vector<2x16x1xf32> to vector<2x16x16xf32>
    %93 = arith.subf %89, %92 : vector<2x16x16xf32>
    %94 = math.exp %93 : vector<2x16x16xf32>
    %95 = vector.shape_cast %11 : vector<16x16xf32> to vector<1x16x16xf32>
    %96 = vector.broadcast %95 : vector<1x16x16xf32> to vector<2x16x16xf32>
    %97 = arith.mulf %94, %96 : vector<2x16x16xf32>
    %cst_41 = arith.constant dense<0.000000e+00> : vector<2x16xf32>
    %98 = vector.multi_reduction <add>, %97, %cst_41 [2] : vector<2x16x16xf32> to vector<2x16xf32>
    %99 = vector.shape_cast %98 : vector<2x16xf32> to vector<2x16x1xf32>
    %cst_42 = arith.constant 1.000000e-16 : f32
    %100 = vector.broadcast %cst_42 : f32 to vector<2x16x1xf32>
    %101 = arith.maximumf %99, %100 : vector<2x16x1xf32>
    %102 = tpu.reciprocal %101 {approx = true} : vector<2x16x1xf32> -> vector<2x16x1xf32>
    %103 = vector.broadcast %102 : vector<2x16x1xf32> to vector<2x16x16xf32>
    %104 = arith.mulf %97, %103 : vector<2x16x16xf32>
    %c0_43 = arith.constant 0 : index
    %c0_44 = arith.constant 0 : index
    %105 = vector.load %arg11[%c0_43, %c0_44] : memref<1x64xf32, #tpu.memory_space<vmem>>, vector<1x64xf32>
    %106 = vector.extract_strided_slice %104 {offsets = [0, 0, 0], sizes = [1, 16, 16], strides = [1, 1, 1]} : vector<2x16x16xf32> to vector<1x16x16xf32>
    %107 = vector.shape_cast %106 : vector<1x16x16xf32> to vector<16x16xf32>
    %108 = vector.extract_strided_slice %23 {offsets = [0, 0], sizes = [16, 32], strides = [1, 1]} : vector<16x128xf32> to vector<16x32xf32>
    %cst_45 = arith.constant dense<0.000000e+00> : vector<16x32xf32>
    %109 = tpu.matmul %107, %108, %cst_45 {dimension_numbers = #tpu.dot_dimension_numbers<[1], [0], [0], [1], [0, 0, 1, 1], [], []>} : vector<16x16xf32>, vector<16x32xf32>, vector<16x32xf32> -> vector<16x32xf32>
    %110 = vector.extract_strided_slice %105 {offsets = [0, 0], sizes = [1, 32], strides = [1, 1]} : vector<1x64xf32> to vector<1x32xf32>
    %111 = vector.broadcast %110 : vector<1x32xf32> to vector<16x32xf32>
    %112 = arith.addf %109, %111 : vector<16x32xf32>
    %cst_46 = arith.constant 0.000000e+00 : f32
    %113 = vector.broadcast %cst_46 : f32 to vector<16x32xf32>
    %114 = arith.maximumf %112, %113 : vector<16x32xf32>
    %c0_47 = arith.constant 0 : index
    %c0_48 = arith.constant 0 : index
    %115 = vector.load %arg20[%c0_47, %c0_48] : memref<16x64xf32, #tpu.memory_space<vmem>>, vector<16x32xf32>
    tpu.vector_store %arg20[%c0_47, %c0_48], %114 {strides = array<i32>} : memref<16x64xf32, #tpu.memory_space<vmem>>, vector<16x32xf32>,
    %116 = vector.extract_strided_slice %104 {offsets = [1, 0, 0], sizes = [1, 16, 16], strides = [1, 1, 1]} : vector<2x16x16xf32> to vector<1x16x16xf32>
    %117 = vector.shape_cast %116 : vector<1x16x16xf32> to vector<16x16xf32>
    %118 = vector.extract_strided_slice %23 {offsets = [0, 32], sizes = [16, 32], strides = [1, 1]} : vector<16x128xf32> to vector<16x32xf32>
    %cst_49 = arith.constant dense<0.000000e+00> : vector<16x32xf32>
    %119 = tpu.matmul %117, %118, %cst_49 {dimension_numbers = #tpu.dot_dimension_numbers<[1], [0], [0], [1], [0, 0, 1, 1], [], []>} : vector<16x16xf32>, vector<16x32xf32>, vector<16x32xf32> -> vector<16x32xf32>
    %120 = vector.extract_strided_slice %105 {offsets = [0, 32], sizes = [1, 32], strides = [1, 1]} : vector<1x64xf32> to vector<1x32xf32>
    %121 = vector.broadcast %120 : vector<1x32xf32> to vector<16x32xf32>
    %122 = arith.addf %119, %121 : vector<16x32xf32>
    %cst_50 = arith.constant 0.000000e+00 : f32
    %123 = vector.broadcast %cst_50 : f32 to vector<16x32xf32>
    %124 = arith.maximumf %122, %123 : vector<16x32xf32>
    %c0_51 = arith.constant 0 : index
    %c32_52 = arith.constant 32 : index
    %125 = vector.load %arg20[%c0_51, %c32_52] : memref<16x64xf32, #tpu.memory_space<vmem>>, vector<16x32xf32>
    tpu.vector_store %arg20[%c0_51, %c32_52], %124 {strides = array<i32>} : memref<16x64xf32, #tpu.memory_space<vmem>>, vector<16x32xf32>,
    %c0_53 = arith.constant 0 : index
    %c0_54 = arith.constant 0 : index
    %126 = vector.load %arg20[%c0_53, %c0_54] : memref<16x64xf32, #tpu.memory_space<vmem>>, vector<16x64xf32>
    %c0_55 = arith.constant 0 : index
    %c0_56 = arith.constant 0 : index
    %127 = vector.load %arg12[%c0_55, %c0_56] : memref<64x128xf32, #tpu.memory_space<vmem>>, vector<64x128xf32>
    %cst_57 = arith.constant dense<0.000000e+00> : vector<16x128xf32>
    %128 = tpu.matmul %126, %127, %cst_57 {dimension_numbers = #tpu.dot_dimension_numbers<[1], [0], [0], [1], [0, 0, 1, 1], [], []>} : vector<16x64xf32>, vector<64x128xf32>, vector<16x128xf32> -> vector<16x128xf32>
    %c0_58 = arith.constant 0 : index
    %c0_59 = arith.constant 0 : index
    %129 = vector.load %arg19[%c0_58, %c0_59] : memref<16x64xf32, #tpu.memory_space<vmem>>, vector<16x64xf32>
    %c0_60 = arith.constant 0 : index
    %c0_61 = arith.constant 0 : index
    %130 = vector.load %arg13[%c0_60, %c0_61] : memref<64x128xf32, #tpu.memory_space<vmem>>, vector<64x128xf32>
    %cst_62 = arith.constant dense<0.000000e+00> : vector<16x128xf32>
    %131 = tpu.matmul %129, %130, %cst_62 {dimension_numbers = #tpu.dot_dimension_numbers<[1], [0], [0], [1], [0, 0, 1, 1], [], []>} : vector<16x64xf32>, vector<64x128xf32>, vector<16x128xf32> -> vector<16x128xf32>
    %132 = vector.extract_strided_slice %128 {offsets = [0, 64], sizes = [16, 2], strides = [1, 1]} : vector<16x128xf32> to vector<16x2xf32>
    %133 = vector.extract_strided_slice %131 {offsets = [0, 66], sizes = [16, 2], strides = [1, 1]} : vector<16x128xf32> to vector<16x2xf32>
    %134 = tpu.transpose %133, [1, 0] : vector<16x2xf32> -> vector<2x16xf32>
    %135 = vector.shape_cast %134 : vector<2x16xf32> to vector<2x16x1xf32>
    %136 = tpu.transpose %132, [1, 0] : vector<16x2xf32> -> vector<2x16xf32>
    %137 = vector.shape_cast %136 : vector<2x16xf32> to vector<2x1x16xf32>
    %138 = vector.broadcast %135 : vector<2x16x1xf32> to vector<2x16x16xf32>
    %139 = vector.broadcast %137 : vector<2x1x16xf32> to vector<2x16x16xf32>
    %140 = arith.addf %138, %139 : vector<2x16x16xf32>
    %cst_63 = arith.constant 2.000000e-01 : f32
    %141 = vector.broadcast %cst_63 : f32 to vector<2x16x16xf32>
    %142 = arith.mulf %141, %140 : vector<2x16x16xf32>
    %143 = arith.maximumf %140, %142 : vector<2x16x16xf32>
    %144 = vector.shape_cast %15 : vector<16x16xf32> to vector<1x16x16xf32>
    %145 = vector.broadcast %144 : vector<1x16x16xf32> to vector<2x16x16xf32>
    %146 = arith.addf %143, %145 : vector<2x16x16xf32>
    %cst_64 = arith.constant dense<0xFF800000> : vector<2x16xf32>
    %147 = vector.multi_reduction <maximumf>, %146, %cst_64 [2] : vector<2x16x16xf32> to vector<2x16xf32>
    %148 = vector.shape_cast %147 : vector<2x16xf32> to vector<2x16x1xf32>
    %149 = vector.broadcast %148 : vector<2x16x1xf32> to vector<2x16x16xf32>
    %150 = arith.subf %146, %149 : vector<2x16x16xf32>
    %151 = math.exp %150 : vector<2x16x16xf32>
    %152 = vector.shape_cast %10 : vector<16x16xf32> to vector<1x16x16xf32>
    %153 = vector.broadcast %152 : vector<1x16x16xf32> to vector<2x16x16xf32>
    %154 = arith.mulf %151, %153 : vector<2x16x16xf32>
    %cst_65 = arith.constant dense<0.000000e+00> : vector<2x16xf32>
    %155 = vector.multi_reduction <add>, %154, %cst_65 [2] : vector<2x16x16xf32> to vector<2x16xf32>
    %156 = vector.shape_cast %155 : vector<2x16xf32> to vector<2x16x1xf32>
    %cst_66 = arith.constant 1.000000e-16 : f32
    %157 = vector.broadcast %cst_66 : f32 to vector<2x16x1xf32>
    %158 = arith.maximumf %156, %157 : vector<2x16x1xf32>
    %159 = tpu.reciprocal %158 {approx = true} : vector<2x16x1xf32> -> vector<2x16x1xf32>
    %160 = vector.broadcast %159 : vector<2x16x1xf32> to vector<2x16x16xf32>
    %161 = arith.mulf %154, %160 : vector<2x16x16xf32>
    %c0_67 = arith.constant 0 : index
    %c0_68 = arith.constant 0 : index
    %162 = vector.load %arg14[%c0_67, %c0_68] : memref<1x64xf32, #tpu.memory_space<vmem>>, vector<1x64xf32>
    %163 = vector.extract_strided_slice %161 {offsets = [0, 0, 0], sizes = [1, 16, 16], strides = [1, 1, 1]} : vector<2x16x16xf32> to vector<1x16x16xf32>
    %164 = vector.shape_cast %163 : vector<1x16x16xf32> to vector<16x16xf32>
    %165 = vector.extract_strided_slice %128 {offsets = [0, 0], sizes = [16, 32], strides = [1, 1]} : vector<16x128xf32> to vector<16x32xf32>
    %cst_69 = arith.constant dense<0.000000e+00> : vector<16x32xf32>
    %166 = tpu.matmul %164, %165, %cst_69 {dimension_numbers = #tpu.dot_dimension_numbers<[1], [0], [0], [1], [0, 0, 1, 1], [], []>} : vector<16x16xf32>, vector<16x32xf32>, vector<16x32xf32> -> vector<16x32xf32>
    %167 = vector.extract_strided_slice %162 {offsets = [0, 0], sizes = [1, 32], strides = [1, 1]} : vector<1x64xf32> to vector<1x32xf32>
    %168 = vector.broadcast %167 : vector<1x32xf32> to vector<16x32xf32>
    %169 = arith.addf %166, %168 : vector<16x32xf32>
    %c0_70 = arith.constant 0 : index
    %c0_71 = arith.constant 0 : index
    %170 = vector.load %arg21[%c0_70, %c0_71] : memref<16x64xf32, #tpu.memory_space<vmem>>, vector<16x32xf32>
    tpu.vector_store %arg21[%c0_70, %c0_71], %169 {strides = array<i32>} : memref<16x64xf32, #tpu.memory_space<vmem>>, vector<16x32xf32>,
    %171 = vector.extract_strided_slice %161 {offsets = [1, 0, 0], sizes = [1, 16, 16], strides = [1, 1, 1]} : vector<2x16x16xf32> to vector<1x16x16xf32>
    %172 = vector.shape_cast %171 : vector<1x16x16xf32> to vector<16x16xf32>
    %173 = vector.extract_strided_slice %128 {offsets = [0, 32], sizes = [16, 32], strides = [1, 1]} : vector<16x128xf32> to vector<16x32xf32>
    %cst_72 = arith.constant dense<0.000000e+00> : vector<16x32xf32>
    %174 = tpu.matmul %172, %173, %cst_72 {dimension_numbers = #tpu.dot_dimension_numbers<[1], [0], [0], [1], [0, 0, 1, 1], [], []>} : vector<16x16xf32>, vector<16x32xf32>, vector<16x32xf32> -> vector<16x32xf32>
    %175 = vector.extract_strided_slice %162 {offsets = [0, 32], sizes = [1, 32], strides = [1, 1]} : vector<1x64xf32> to vector<1x32xf32>
    %176 = vector.broadcast %175 : vector<1x32xf32> to vector<16x32xf32>
    %177 = arith.addf %174, %176 : vector<16x32xf32>
    %c0_73 = arith.constant 0 : index
    %c32_74 = arith.constant 32 : index
    %178 = vector.load %arg21[%c0_73, %c32_74] : memref<16x64xf32, #tpu.memory_space<vmem>>, vector<16x32xf32>
    tpu.vector_store %arg21[%c0_73, %c32_74], %177 {strides = array<i32>} : memref<16x64xf32, #tpu.memory_space<vmem>>, vector<16x32xf32>,
    %179 = vector.extract_strided_slice %131 {offsets = [0, 64], sizes = [16, 2], strides = [1, 1]} : vector<16x128xf32> to vector<16x2xf32>
    %180 = vector.extract_strided_slice %128 {offsets = [0, 66], sizes = [16, 2], strides = [1, 1]} : vector<16x128xf32> to vector<16x2xf32>
    %181 = tpu.transpose %180, [1, 0] : vector<16x2xf32> -> vector<2x16xf32>
    %182 = vector.shape_cast %181 : vector<2x16xf32> to vector<2x16x1xf32>
    %183 = tpu.transpose %179, [1, 0] : vector<16x2xf32> -> vector<2x16xf32>
    %184 = vector.shape_cast %183 : vector<2x16xf32> to vector<2x1x16xf32>
    %185 = vector.broadcast %182 : vector<2x16x1xf32> to vector<2x16x16xf32>
    %186 = vector.broadcast %184 : vector<2x1x16xf32> to vector<2x16x16xf32>
    %187 = arith.addf %185, %186 : vector<2x16x16xf32>
    %cst_75 = arith.constant 2.000000e-01 : f32
    %188 = vector.broadcast %cst_75 : f32 to vector<2x16x16xf32>
    %189 = arith.mulf %188, %187 : vector<2x16x16xf32>
    %190 = arith.maximumf %187, %189 : vector<2x16x16xf32>
    %191 = vector.shape_cast %19 : vector<16x16xf32> to vector<1x16x16xf32>
    %192 = vector.broadcast %191 : vector<1x16x16xf32> to vector<2x16x16xf32>
    %193 = arith.addf %190, %192 : vector<2x16x16xf32>
    %cst_76 = arith.constant dense<0xFF800000> : vector<2x16xf32>
    %194 = vector.multi_reduction <maximumf>, %193, %cst_76 [2] : vector<2x16x16xf32> to vector<2x16xf32>
    %195 = vector.shape_cast %194 : vector<2x16xf32> to vector<2x16x1xf32>
    %196 = vector.broadcast %195 : vector<2x16x1xf32> to vector<2x16x16xf32>
    %197 = arith.subf %193, %196 : vector<2x16x16xf32>
    %198 = math.exp %197 : vector<2x16x16xf32>
    %199 = vector.shape_cast %11 : vector<16x16xf32> to vector<1x16x16xf32>
    %200 = vector.broadcast %199 : vector<1x16x16xf32> to vector<2x16x16xf32>
    %201 = arith.mulf %198, %200 : vector<2x16x16xf32>
    %cst_77 = arith.constant dense<0.000000e+00> : vector<2x16xf32>
    %202 = vector.multi_reduction <add>, %201, %cst_77 [2] : vector<2x16x16xf32> to vector<2x16xf32>
    %203 = vector.shape_cast %202 : vector<2x16xf32> to vector<2x16x1xf32>
    %cst_78 = arith.constant 1.000000e-16 : f32
    %204 = vector.broadcast %cst_78 : f32 to vector<2x16x1xf32>
    %205 = arith.maximumf %203, %204 : vector<2x16x1xf32>
    %206 = tpu.reciprocal %205 {approx = true} : vector<2x16x1xf32> -> vector<2x16x1xf32>
    %207 = vector.broadcast %206 : vector<2x16x1xf32> to vector<2x16x16xf32>
    %208 = arith.mulf %201, %207 : vector<2x16x16xf32>
    %c0_79 = arith.constant 0 : index
    %c0_80 = arith.constant 0 : index
    %209 = vector.load %arg15[%c0_79, %c0_80] : memref<1x64xf32, #tpu.memory_space<vmem>>, vector<1x64xf32>
    %210 = vector.extract_strided_slice %208 {offsets = [0, 0, 0], sizes = [1, 16, 16], strides = [1, 1, 1]} : vector<2x16x16xf32> to vector<1x16x16xf32>
    %211 = vector.shape_cast %210 : vector<1x16x16xf32> to vector<16x16xf32>
    %212 = vector.extract_strided_slice %131 {offsets = [0, 0], sizes = [16, 32], strides = [1, 1]} : vector<16x128xf32> to vector<16x32xf32>
    %cst_81 = arith.constant dense<0.000000e+00> : vector<16x32xf32>
    %213 = tpu.matmul %211, %212, %cst_81 {dimension_numbers = #tpu.dot_dimension_numbers<[1], [0], [0], [1], [0, 0, 1, 1], [], []>} : vector<16x16xf32>, vector<16x32xf32>, vector<16x32xf32> -> vector<16x32xf32>
    %214 = vector.extract_strided_slice %209 {offsets = [0, 0], sizes = [1, 32], strides = [1, 1]} : vector<1x64xf32> to vector<1x32xf32>
    %215 = vector.broadcast %214 : vector<1x32xf32> to vector<16x32xf32>
    %216 = arith.addf %213, %215 : vector<16x32xf32>
    %c0_82 = arith.constant 0 : index
    %c0_83 = arith.constant 0 : index
    %217 = vector.load %arg22[%c0_82, %c0_83] : memref<16x64xf32, #tpu.memory_space<vmem>>, vector<16x32xf32>
    tpu.vector_store %arg22[%c0_82, %c0_83], %216 {strides = array<i32>} : memref<16x64xf32, #tpu.memory_space<vmem>>, vector<16x32xf32>,
    %218 = vector.extract_strided_slice %208 {offsets = [1, 0, 0], sizes = [1, 16, 16], strides = [1, 1, 1]} : vector<2x16x16xf32> to vector<1x16x16xf32>
    %219 = vector.shape_cast %218 : vector<1x16x16xf32> to vector<16x16xf32>
    %220 = vector.extract_strided_slice %131 {offsets = [0, 32], sizes = [16, 32], strides = [1, 1]} : vector<16x128xf32> to vector<16x32xf32>
    %cst_84 = arith.constant dense<0.000000e+00> : vector<16x32xf32>
    %221 = tpu.matmul %219, %220, %cst_84 {dimension_numbers = #tpu.dot_dimension_numbers<[1], [0], [0], [1], [0, 0, 1, 1], [], []>} : vector<16x16xf32>, vector<16x32xf32>, vector<16x32xf32> -> vector<16x32xf32>
    %222 = vector.extract_strided_slice %209 {offsets = [0, 32], sizes = [1, 32], strides = [1, 1]} : vector<1x64xf32> to vector<1x32xf32>
    %223 = vector.broadcast %222 : vector<1x32xf32> to vector<16x32xf32>
    %224 = arith.addf %221, %223 : vector<16x32xf32>
    %c0_85 = arith.constant 0 : index
    %c32_86 = arith.constant 32 : index
    %225 = vector.load %arg22[%c0_85, %c32_86] : memref<16x64xf32, #tpu.memory_space<vmem>>, vector<16x32xf32>
    tpu.vector_store %arg22[%c0_85, %c32_86], %224 {strides = array<i32>} : memref<16x64xf32, #tpu.memory_space<vmem>>, vector<16x32xf32>,
    %c0_87 = arith.constant 0 : index
    %226 = memref.load %arg16[%c0_87] : memref<8xi32, #tpu.memory_space<smem>>
    %c0_88 = arith.constant 0 : index
    %227 = memref.load %arg17[%c0_88] : memref<8xi32, #tpu.memory_space<smem>>
    %228 = arith.index_cast %226 : i32 to index
    %c0_89 = arith.constant 0 : index
    %229 = vector.load %arg22[%228, %c0_89] : memref<16x64xf32, #tpu.memory_space<vmem>>, vector<1x64xf32>
    %230 = arith.index_cast %227 : i32 to index
    %c0_90 = arith.constant 0 : index
    %231 = vector.load %arg21[%230, %c0_90] : memref<16x64xf32, #tpu.memory_space<vmem>>, vector<1x64xf32>
    %232 = arith.mulf %229, %231 : vector<1x64xf32>
    %c0_91 = arith.constant 0 : index
    %c0_92 = arith.constant 0 : index
    %233 = vector.load %arg23[%c0_91, %c0_92] : memref<8x64xf32, #tpu.memory_space<vmem>>, vector<1x64xf32>
    tpu.vector_store %arg23[%c0_91, %c0_92], %232 {strides = array<i32>} : memref<8x64xf32, #tpu.memory_space<vmem>>, vector<1x64xf32>,
    %c1 = arith.constant 1 : index
    %234 = memref.load %arg16[%c1] : memref<8xi32, #tpu.memory_space<smem>>
    %c1_93 = arith.constant 1 : index
    %235 = memref.load %arg17[%c1_93] : memref<8xi32, #tpu.memory_space<smem>>
    %236 = arith.index_cast %234 : i32 to index
    %c0_94 = arith.constant 0 : index
    %237 = vector.load %arg22[%236, %c0_94] : memref<16x64xf32, #tpu.memory_space<vmem>>, vector<1x64xf32>
    %238 = arith.index_cast %235 : i32 to index
    %c0_95 = arith.constant 0 : index
    %239 = vector.load %arg21[%238, %c0_95] : memref<16x64xf32, #tpu.memory_space<vmem>>, vector<1x64xf32>
    %240 = arith.mulf %237, %239 : vector<1x64xf32>
    %c1_96 = arith.constant 1 : index
    %c0_97 = arith.constant 0 : index
    %241 = vector.load %arg23[%c1_96, %c0_97] : memref<8x64xf32, #tpu.memory_space<vmem>>, vector<1x64xf32>
    tpu.vector_store %arg23[%c1_96, %c0_97], %240 {strides = array<i32>} : memref<8x64xf32, #tpu.memory_space<vmem>>, vector<1x64xf32>,
    %c2 = arith.constant 2 : index
    %242 = memref.load %arg16[%c2] : memref<8xi32, #tpu.memory_space<smem>>
    %c2_98 = arith.constant 2 : index
    %243 = memref.load %arg17[%c2_98] : memref<8xi32, #tpu.memory_space<smem>>
    %244 = arith.index_cast %242 : i32 to index
    %c0_99 = arith.constant 0 : index
    %245 = vector.load %arg22[%244, %c0_99] : memref<16x64xf32, #tpu.memory_space<vmem>>, vector<1x64xf32>
    %246 = arith.index_cast %243 : i32 to index
    %c0_100 = arith.constant 0 : index
    %247 = vector.load %arg21[%246, %c0_100] : memref<16x64xf32, #tpu.memory_space<vmem>>, vector<1x64xf32>
    %248 = arith.mulf %245, %247 : vector<1x64xf32>
    %c2_101 = arith.constant 2 : index
    %c0_102 = arith.constant 0 : index
    %249 = vector.load %arg23[%c2_101, %c0_102] : memref<8x64xf32, #tpu.memory_space<vmem>>, vector<1x64xf32>
    tpu.vector_store %arg23[%c2_101, %c0_102], %248 {strides = array<i32>} : memref<8x64xf32, #tpu.memory_space<vmem>>, vector<1x64xf32>,
    %c3 = arith.constant 3 : index
    %250 = memref.load %arg16[%c3] : memref<8xi32, #tpu.memory_space<smem>>
    %c3_103 = arith.constant 3 : index
    %251 = memref.load %arg17[%c3_103] : memref<8xi32, #tpu.memory_space<smem>>
    %252 = arith.index_cast %250 : i32 to index
    %c0_104 = arith.constant 0 : index
    %253 = vector.load %arg22[%252, %c0_104] : memref<16x64xf32, #tpu.memory_space<vmem>>, vector<1x64xf32>
    %254 = arith.index_cast %251 : i32 to index
    %c0_105 = arith.constant 0 : index
    %255 = vector.load %arg21[%254, %c0_105] : memref<16x64xf32, #tpu.memory_space<vmem>>, vector<1x64xf32>
    %256 = arith.mulf %253, %255 : vector<1x64xf32>
    %c3_106 = arith.constant 3 : index
    %c0_107 = arith.constant 0 : index
    %257 = vector.load %arg23[%c3_106, %c0_107] : memref<8x64xf32, #tpu.memory_space<vmem>>, vector<1x64xf32>
    tpu.vector_store %arg23[%c3_106, %c0_107], %256 {strides = array<i32>} : memref<8x64xf32, #tpu.memory_space<vmem>>, vector<1x64xf32>,
    %c4 = arith.constant 4 : index
    %258 = memref.load %arg16[%c4] : memref<8xi32, #tpu.memory_space<smem>>
    %c4_108 = arith.constant 4 : index
    %259 = memref.load %arg17[%c4_108] : memref<8xi32, #tpu.memory_space<smem>>
    %260 = arith.index_cast %258 : i32 to index
    %c0_109 = arith.constant 0 : index
    %261 = vector.load %arg22[%260, %c0_109] : memref<16x64xf32, #tpu.memory_space<vmem>>, vector<1x64xf32>
    %262 = arith.index_cast %259 : i32 to index
    %c0_110 = arith.constant 0 : index
    %263 = vector.load %arg21[%262, %c0_110] : memref<16x64xf32, #tpu.memory_space<vmem>>, vector<1x64xf32>
    %264 = arith.mulf %261, %263 : vector<1x64xf32>
    %c4_111 = arith.constant 4 : index
    %c0_112 = arith.constant 0 : index
    %265 = vector.load %arg23[%c4_111, %c0_112] : memref<8x64xf32, #tpu.memory_space<vmem>>, vector<1x64xf32>
    tpu.vector_store %arg23[%c4_111, %c0_112], %264 {strides = array<i32>} : memref<8x64xf32, #tpu.memory_space<vmem>>, vector<1x64xf32>,
    %c5 = arith.constant 5 : index
    %266 = memref.load %arg16[%c5] : memref<8xi32, #tpu.memory_space<smem>>
    %c5_113 = arith.constant 5 : index
    %267 = memref.load %arg17[%c5_113] : memref<8xi32, #tpu.memory_space<smem>>
    %268 = arith.index_cast %266 : i32 to index
    %c0_114 = arith.constant 0 : index
    %269 = vector.load %arg22[%268, %c0_114] : memref<16x64xf32, #tpu.memory_space<vmem>>, vector<1x64xf32>
    %270 = arith.index_cast %267 : i32 to index
    %c0_115 = arith.constant 0 : index
    %271 = vector.load %arg21[%270, %c0_115] : memref<16x64xf32, #tpu.memory_space<vmem>>, vector<1x64xf32>
    %272 = arith.mulf %269, %271 : vector<1x64xf32>
    %c5_116 = arith.constant 5 : index
    %c0_117 = arith.constant 0 : index
    %273 = vector.load %arg23[%c5_116, %c0_117] : memref<8x64xf32, #tpu.memory_space<vmem>>, vector<1x64xf32>
    tpu.vector_store %arg23[%c5_116, %c0_117], %272 {strides = array<i32>} : memref<8x64xf32, #tpu.memory_space<vmem>>, vector<1x64xf32>,
    %c6 = arith.constant 6 : index
    %274 = memref.load %arg16[%c6] : memref<8xi32, #tpu.memory_space<smem>>
    %c6_118 = arith.constant 6 : index
    %275 = memref.load %arg17[%c6_118] : memref<8xi32, #tpu.memory_space<smem>>
    %276 = arith.index_cast %274 : i32 to index
    %c0_119 = arith.constant 0 : index
    %277 = vector.load %arg22[%276, %c0_119] : memref<16x64xf32, #tpu.memory_space<vmem>>, vector<1x64xf32>
    %278 = arith.index_cast %275 : i32 to index
    %c0_120 = arith.constant 0 : index
    %279 = vector.load %arg21[%278, %c0_120] : memref<16x64xf32, #tpu.memory_space<vmem>>, vector<1x64xf32>
    %280 = arith.mulf %277, %279 : vector<1x64xf32>
    %c6_121 = arith.constant 6 : index
    %c0_122 = arith.constant 0 : index
    %281 = vector.load %arg23[%c6_121, %c0_122] : memref<8x64xf32, #tpu.memory_space<vmem>>, vector<1x64xf32>
    tpu.vector_store %arg23[%c6_121, %c0_122], %280 {strides = array<i32>} : memref<8x64xf32, #tpu.memory_space<vmem>>, vector<1x64xf32>,
    %c7 = arith.constant 7 : index
    %282 = memref.load %arg16[%c7] : memref<8xi32, #tpu.memory_space<smem>>
    %c7_123 = arith.constant 7 : index
    %283 = memref.load %arg17[%c7_123] : memref<8xi32, #tpu.memory_space<smem>>
    %284 = arith.index_cast %282 : i32 to index
    %c0_124 = arith.constant 0 : index
    %285 = vector.load %arg22[%284, %c0_124] : memref<16x64xf32, #tpu.memory_space<vmem>>, vector<1x64xf32>
    %286 = arith.index_cast %283 : i32 to index
    %c0_125 = arith.constant 0 : index
    %287 = vector.load %arg21[%286, %c0_125] : memref<16x64xf32, #tpu.memory_space<vmem>>, vector<1x64xf32>
    %288 = arith.mulf %285, %287 : vector<1x64xf32>
    %c7_126 = arith.constant 7 : index
    %c0_127 = arith.constant 0 : index
    %289 = vector.load %arg23[%c7_126, %c0_127] : memref<8x64xf32, #tpu.memory_space<vmem>>, vector<1x64xf32>
    tpu.vector_store %arg23[%c7_126, %c0_127], %288 {strides = array<i32>} : memref<8x64xf32, #tpu.memory_space<vmem>>, vector<1x64xf32>,
    %c0_128 = arith.constant 0 : index
    %c0_129 = arith.constant 0 : index
    %290 = vector.load %arg23[%c0_128, %c0_129] : memref<8x64xf32, #tpu.memory_space<vmem>>, vector<8x64xf32>
    %cst_130 = arith.constant dense<0.000000e+00> : vector<8xf32>
    %291 = vector.multi_reduction <add>, %290, %cst_130 [1] : vector<8x64xf32> to vector<8xf32>
    %292 = vector.shape_cast %291 : vector<8xf32> to vector<8x1xf32>
    %293 = arith.negf %292 : vector<8x1xf32>
    %294 = math.exp %293 : vector<8x1xf32>
    %cst_131 = arith.constant 1.000000e+00 : f32
    %295 = vector.broadcast %cst_131 : f32 to vector<8x1xf32>
    %296 = arith.addf %295, %294 : vector<8x1xf32>
    %297 = arith.divf %295, %296 : vector<8x1xf32>
    %298 = vector.shape_cast %297 : vector<8x1xf32> to vector<8x1xf32>
    %299 = vector.broadcast %298 : vector<8x1xf32> to vector<8x128xf32>
    %c0_132 = arith.constant 0 : index
    %c0_133 = arith.constant 0 : index
    %300 = vector.load %arg18[%c0_132, %c0_133] : memref<8x128xf32, #tpu.memory_space<vmem>>, vector<8x128xf32>
    tpu.vector_store %arg18[%c0_132, %c0_133], %299 {strides = array<i32>} : memref<8x128xf32, #tpu.memory_space<vmem>>, vector<8x128xf32>,
    return
  }
}

</mosaic_0001>

<bundles_post_ra>
// kernel: model_forward.1
= control target key start
LH: loop header
LB: loop body
LE: loop exit
PB: predicated region body
PF: predicated region fallthrough
CT: control target
= control target key end

     0   :  { %s2261_s0 = inlined_call_operand.vmem [shape: f32[16,32], index: 0, kind: input, shape index: {}]   ;;  %s2262_s1 = inlined_call_operand.vmem [shape: f32[32,32], index: 1, kind: input, shape index: {}]   ;;  %s2263_s2 = inlined_call_operand.vmem [shape: f32[16,32], index: 2, kind: input, shape index: {}]   ;;  %s2264_s3 = inlined_call_operand.vmem [shape: f32[16,32], index: 3, kind: input, shape index: {}]   ;;  %s2265_s4 = inlined_call_operand.vmem [shape: f32[32,32], index: 4, kind: input, shape index: {}]   ;;  %s2266_s5 = inlined_call_operand.vmem [shape: f32[16,32], index: 5, kind: input, shape index: {}]   ;;  %s2267_s6 = inlined_call_operand.vmem [shape: f32[16,16], index: 6, kind: input, shape index: {}]   ;;  %s2268_s7 = inlined_call_operand.vmem [shape: f32[16,16], index: 7, kind: input, shape index: {}]   ;;  %s2269_s8 = inlined_call_operand.vmem [shape: f32[32,128], index: 8, kind: input, shape index: {}]   ;;  %s2270_s9 = inlined_call_operand.vmem [shape: f32[32,128], index: 9, kind: input, shape index: {}]   ;;  %s2271_s10 = inlined_call_operand.vmem [shape: f32[1,64], index: 10, kind: input, shape index: {}]   ;;  %s2272_s11 = inlined_call_operand.vmem [shape: f32[1,64], index: 11, kind: input, shape index: {}]   ;;  %s2273_s12 = inlined_call_operand.vmem [shape: f32[64,128], index: 12, kind: input, shape index: {}]   ;;  %s2274_s13 = inlined_call_operand.vmem [shape: f32[64,128], index: 13, kind: input, shape index: {}]   ;;  %s2275_s14 = inlined_call_operand.vmem [shape: f32[1,64], index: 14, kind: input, shape index: {}]   ;;  %s2276_s15 = inlined_call_operand.vmem [shape: f32[1,64], index: 15, kind: input, shape index: {}]   ;;  %s2277_s16 = inlined_call_operand.vmem [shape: s32[8], index: 16, kind: input, shape index: {}]   ;;  %s2278_s17 = inlined_call_operand.vmem [shape: s32[8], index: 17, kind: input, shape index: {}]   ;;  %s2279_s18 = inlined_call_operand.vmem [shape: f32[8,128], index: 18, kind: output, shape index: {}]  }
   0x1   :  { %2283 = sst [smem:[#allocation13_spill]] %s2261_s0 }
   0x2   :  { %2284 = sst [smem:[#allocation14_spill]] %s2262_s1 }
   0x3   :  { %2285 = sst [smem:[#allocation15_spill]] %s2263_s2 }
   0x4   :  { %23 = vsyncpa [#allocation8], 0  ;;  %s62_s29 = sshll.u32 %s2277_s16, 4  ;;  %s63_s29 = int_to_ptr.vmem [resolvable:$true] %s62_s29 }
   0x5   :  { %24 = vsyncpa [#allocation10], 0  ;;  %s71_s19 = sshll.u32 %s2278_s17, 4  ;;  %s1675_s1 = smov [#allocation7]   ;;  %s72_s19 = int_to_ptr.vmem [resolvable:$true] %s71_s19 }
   0x6   :  { %65 = dma.vmem_to_smem %s63_s29, 16, %s1675_s1, [#allocation8]  }
   0x7   :  { %s1676_s20 = smov [#allocation9]  }
   0x8   :  { %74 = dma.vmem_to_smem %s72_s19, 16, %s1676_s20, [#allocation10]  }
   0x9   :  { %1671 = dma.done.wait [#allocation8], 16  }
   0xa   :  { %1672 = vsyncadd [#allocation8], 4294967280 }
   0xb   :  { %1673 = dma.done.wait [#allocation10], 16  }
   0xc   :  { %1674 = vsyncadd [#allocation10], 4294967280 }
   0xd   :  { %83 = sfence }
   0xe   :  { %s2286_s2 = sld [smem:[#allocation14_spill]]  ;;  %v127_v1 = vld [vmem:[%s2265_s4 + $0x18] sm:$0xff]  ;;  %v126_v3 = vld [vmem:[%s2265_s4 + $0x10] sm:$0xff]  ;;  %v125_v5 = vld [vmem:[%s2265_s4 + $0x8] sm:$0xff]  ;;  %vm92_vm0 = vcmask 261120   ;;  %s1677_s30 = smov 62   ;;  %v278_v37 = vlaneseq }
   0xf   :  { %148 = vmatpush.msra.mxu1 %v127_v1  ;;  %1532 = vmatpush.msra.mxu3 %v127_v1  ;;  %v124_v7 = vld [vmem:[%s2265_s4] sm:$0xff]  ;;  %s2287_s16 = sld [smem:[#allocation13_spill]]  ;;  %v123_v11 = vld [vmem:[%s2264_s3 + $0x8] sm:$0xff]  ;;  %v174_v12 = vld [vmem:[%s2269_s8 + $0x18] sm:$0xff]  ;;  %vm365_vm1 = vcmask 130048   ;;  %vm503_vm2 = vcmask 523520  }
  0x10   :  { %v122_v9 = vld [vmem:[%s2264_s3] sm:$0xff]  ;;  %v207_v13 = vld [vmem:[%s2270_s9 + $0x18] sm:$0xff]  ;;  %v173_v14 = vld [vmem:[%s2269_s8 + $0x10] sm:$0xff]  ;;  %s2288_s25 = sld [smem:[#allocation15_spill]]  ;;  %s1678_s3 = smov 64   ;;  %v1892_v38 = vshrl.u32 %v278_v37, 7 }
  0x11   :  { %149 = vmatpush.msra.mxu1 %v126_v3  ;;  %1533 = vmatpush.msra.mxu3 %v126_v3  ;;  %v206_v15 = vld [vmem:[%s2270_s9 + $0x10] sm:$0xff]  ;;  %v172_v16 = vld [vmem:[%s2269_s8 + $0x8] sm:$0xff]  ;;  %v171_v18 = vld [vmem:[%s2269_s8] sm:$0xff]  ;;  %vm779_vm3 = vcmask 523264   ;;  %s1516_s29 = sld [smem:[#allocation9 + $0x2]]  ;;  %vm1377_vm4 = vcmask 516096  }
  0x12   :  { %v205_v17 = vld [vmem:[%s2270_s9 + $0x8] sm:$0xff]  ;;  %v204_v19 = vld [vmem:[%s2270_s9] sm:$0xff]  ;;  %1543 = vset.pattern.permute.xlu1 %v1892_v38  ;;  %v1898_v49 = vadd.s32 8, %v1892_v38  ;;  %s2228_s0 = sld [smem:[#allocation9 + $0x5]] }
  0x13   :  { %150 = vmatpush.msra.mxu1 %v125_v5  ;;  %1534 = vmatpush.msra.mxu3 %v125_v5  ;;  %v128_v21 = vld [vmem:[%s2266_s5] sm:$0xff]  ;;  %v129_v27 = vld [vmem:[%s2266_s5 + $0x8] sm:$0xff]  ;;  %s1518_s5 = sld [smem:[#allocation9 + $0x3]] }
  0x14   :  { %v89_v0 = vld [vmem:[%s2286_s2 + $0x18] sm:$0xff]  ;;  %v88_v2 = vld [vmem:[%s2286_s2 + $0x10] sm:$0xff]  ;;  %v87_v4 = vld [vmem:[%s2286_s2 + $0x8] sm:$0xff]  ;;  %s2230_s19 = sld [smem:[#allocation9 + $0x6]] }
  0x15   :  { %111 = vmatpush.msra.mxu0 %v89_v0  ;;  %1528 = vmatpush.msra.mxu2 %v89_v0  ;;  %v86_v6 = vld [vmem:[%s2286_s2] sm:$0xff]  ;;  %v85_v10 = vld [vmem:[%s2287_s16 + $0x8] sm:$0xff]  ;;  %s1370_s1 = sld [smem:[#allocation7]] }
  0x16   :  { %v84_v8 = vld [vmem:[%s2287_s16] sm:$0xff]  ;;  %151 = vmatpush.msra.mxu1 %v124_v7  ;;  %1535 = vmatpush.msra.mxu3 %v124_v7  ;;  %v91_v26 = vld [vmem:[%s2288_s25 + $0x8] sm:$0xff]  ;;  %s1515_s20 = sld [smem:[#allocation7 + $0x2]] }
  0x17   :  { %112 = vmatpush.msra.mxu0 %v88_v2  ;;  %1529 = vmatpush.msra.mxu2 %v88_v2  ;;  %v90_v20 = vld [vmem:[%s2288_s25] sm:$0xff]  ;;  %s1517_s21 = sld [smem:[#allocation7 + $0x3]]  ;;  %s1391_s4 = scalar_lea.vmem [#allocation4], %s1516_s29 }
  0x18   :  { %1483 = vmatmul.msk.f32.vlgmr.msra.gmra.mxu1 %vm92_vm0, %v122_v9  ;;  %1484 = vmatmul.msk.f32.vlgmr.msra.gmra.mxu3 %vm92_vm0, %v123_v11  ;;  %v1905_v61 = vld [vmem:[%s2268_s7] sm:$0xff]  ;;  %v1915_v11 = vld [vmem:[%s2268_s7 + $0x8] sm:$0xff]  ;;  %s1513_s7 = sld [smem:[#allocation7 + $0x1]] }
  0x19   :  { %113 = vmatpush.msra.mxu0 %v87_v4  ;;  %1530 = vmatpush.msra.mxu2 %v87_v4  ;;  %v1487_v1 = vadd.f32 -1.0, %v1905_v61  ;;  %s1519_s22 = sld [smem:[#allocation7 + $0x4]]  ;;  %s1399_s25 = scalar_lea.vmem [#allocation4], %s1518_s5 }
  0x1a   :  { %226 = vmatpush.msrb.mxu3 %v207_v13  ;;  %s2233_s16 = sld [smem:[#allocation7 + $0x5]] }
  0x1b   :  { %114 = vmatpush.msra.mxu0 %v86_v6  ;;  %1531 = vmatpush.msra.mxu2 %v86_v6  ;;  %v1908_v5 = vmul.f32 1e+09, %v1487_v1  ;;  %s2235_s23 = sld [smem:[#allocation7 + $0x6]]  ;;  %s1372_s26 = scalar_lea.vmem [#allocation5], %s1370_s1 }
  0x1c   :  { %1481 = vmatmul.msk.f32.vlgmr.msra.gmra.mxu0 %vm92_vm0, %v84_v8  ;;  %1482 = vmatmul.msk.f32.vlgmr.msra.gmra.mxu2 %vm92_vm0, %v85_v10  ;;  %s2239_s24 = sld [smem:[#allocation9 + $0x7]]  ;;  %s1389_s8 = scalar_lea.vmem [#allocation5], %s1515_s20 }
  0x1d   :  { %193 = vmatpush.msrb.mxu2 %v174_v12  ;;  %227 = vmatpush.msrb.mxu3 %v206_v15  ;;  %s1397_s9 = scalar_lea.vmem [#allocation5], %s1517_s21 }
  0x1e   :  { %s1381_s27 = scalar_lea.vmem [#allocation5], %s1513_s7 }
  0x1f   :  { %194 = vmatpush.msrb.mxu2 %v173_v14  ;;  %228 = vmatpush.msrb.mxu3 %v205_v17  ;;  %v1488_v14 = vadd.f32 -1.0, %v1915_v11 }
  0x20   :  { %s1413_s28 = scalar_lea.vmem [#allocation5], %s2233_s16 }
  0x21   :  { %195 = vmatpush.msrb.mxu2 %v172_v16  ;;  %229 = vmatpush.msrb.mxu3 %v204_v19  ;;  %v1923_v17 = vmul.f32 1e+09, %v1488_v14 }
  0x23   :  { %196 = vmatpush.msrb.mxu2 %v171_v18 }
  0x95   :  { %v153_v23 = vpop.f32.mrf.mxu1 }
  0x96   :  { %v154_v25 = vadd.f32 %v153_v23, %v128_v21 }
  0x98   :  { %1491 = vmatmul.msk.f32.vlgmr.msrb.gmra.mxu3 %vm92_vm0, %v154_v25  ;;  %v1933_v25 = vld [vmem:[%s2267_s6 + $0x8] sm:$0xff] }
  0x99   :  { %v116_v22 = vpop.f32.mrf.mxu0 }
  0x9a   :  { %v117_v24 = vadd.f32 %v116_v22, %v90_v20 }
  0x9b   :  { %v156_v29 = vpop.f32.mrf.mxu3 }
  0x9c   :  { %1489 = vmatmul.msk.f32.vlgmr.msrb.gmra.mxu2 %vm92_vm0, %v117_v24  ;;  %v157_v31 = vadd.f32 %v156_v29, %v129_v27  ;;  %v1938_v27 = vld [vmem:[%s2267_s6] sm:$0xff]  ;;  %v1486_v29 = vadd.f32 -1.0, %v1933_v25  ;;  %s1679_s6 = smov 96  }
  0x9f   :  { %v119_v28 = vpop.f32.mrf.mxu2 }
  0xa0   :  { %v120_v30 = vadd.f32 %v119_v28, %v91_v26  ;;  %1492 = vmatmul.msk.f32.gmra.mxu3 %vm92_vm0, %v157_v31 }
  0xa4   :  { %1490 = vmatmul.msk.f32.gmra.mxu2 %vm92_vm0, %v120_v30 }
 0x11b   :  { %v1864_v33 = vpop.f32.mrf.mxu3 }
 0x11c   :  { %239 = vrot.lane.b32.xlu0 %v1864_v33, %s1677_s30 }
 0x11f   :  { %v1862_v32 = vpop.f32.mrf.mxu2 }
 0x120   :  { %305 = vrot.lane.b32.xlu2 %v1862_v32, %s1678_s3  ;;  %v1553_v34 = vpack.i.bf16 %v1864_v33, %v1862_v32 }
 0x123   :  { %v1874_v36 = vpop.f32.mrf.mxu3 }
 0x124   :  { %241 = vrot.lane.b32.xlu1 %v1874_v36, %s1677_s30  ;;  %706 = vmatpush.msra.mxu2 %v1874_v36 }
 0x125   :  { %506 = vrot.lane.b32.xlu0 %v1862_v32, %s1677_s30 }
 0x126   :  { %707 = vmatpush.msra.mxu2 %v1864_v33 }
 0x127   :  { %v1872_v35 = vpop.f32.mrf.mxu2 }
 0x128   :  { %570 = vrot.lane.b32.xlu2 %v1864_v33, %s1678_s3  ;;  %442 = vmatpush.msrb.mxu0 %v1872_v35  ;;  %v1996_v33 = vld [vmem:[%s2271_s10] ss:$0 sm:$0xff]  ;;  %s2237_s10 = sld [smem:[#allocation7 + $0x7]] }
 0x12a   :  { %443 = vmatpush.msrb.mxu0 %v1862_v32 }
 0x12c   :  { %508 = vrot.lane.b32.xlu1 %v1872_v35, %s1677_s30 }
 0x12d   :  { %307 = vrot.lane.b32.xlu0 %v1872_v35, %s1678_s3 }
 0x134   :  { %572 = vrot.lane.b32.xlu1 %v1874_v36, %s1678_s3 }
 0x17a   :  { %v306_v40 = vpop.permute.xlu2 %305 }
 0x182   :  { %v571_v43 = vpop.permute.xlu2 %570 }
 0x18e   :  { %v240_v39 = vpop.permute.xlu0 %239 }
 0x18f   :  { %245 = vxpose.xlu2.b32.start [1/2] (short) (narrow) %v240_v39, 8 }
 0x196   :  { %v242_v41 = vpop.permute.xlu1 %241 }
 0x197   :  { %v507_v42 = vpop.permute.xlu0 %506  ;;  %246 = vxpose.xlu2.b32.end [2/2] (short) (narrow) %v242_v41, 8 }
 0x198   :  { %512 = vxpose.xlu0.b32.start [1/2] (short) (narrow) %v507_v42, 8 }
 0x19e   :  { %v509_v44 = vpop.permute.xlu1 %508 }
 0x19f   :  { %576 = vxpose.xlu2.b32.start [1/2] (short) (narrow) %v571_v43, 8  ;;  %v308_v50 = vpop.permute.xlu0 %307  ;;  %v1942_v43 = vmul.f32 1e+09, %v1486_v29 }
 0x1a0   :  { %513 = vxpose.xlu0.b32.end [2/2] (short) (narrow) %v509_v44, 8 }
 0x1a6   :  { %v573_v45 = vpop.permute.xlu1 %572 }
 0x1a7   :  { %577 = vxpose.xlu2.b32.end [2/2] (short) (narrow) %v573_v45, 8 }
 0x207   :  { %1545 = vset.pattern.permute.xlu0 %v1892_v38 }
 0x209   :  { %1546 = vset.pattern.permute.xlu2 %v1892_v38 }
 0x228   :  { %v261_v46 = vpop.trf.xlu2 }
 0x229   :  { %v277_v47 = vperm.slane %v261_v46, 0  ;;  %v290_v48 = vperm.slane %v261_v46, 1 }
 0x22b   :  { %282 = vperm.xlu0 %1545, %v277_v47   ;;  %295 = vperm.xlu1 %1543, %v290_v48  }
 0x233   :  { %1547 = vset.pattern.permute.xlu0 %v1898_v49 }
 0x238   :  { %v592_v54 = vpop.trf.xlu2 }
 0x239   :  { %v609_v56 = vrot.slane %v592_v54, 1  ;;  %v610_v58 = vperm.slane %v592_v54, 0 }
 0x23b   :  { %v611_v59 = vperm.slane %v609_v56, 0 }
 0x23c   :  { %v528_v51 = vpop.trf.xlu0 }
 0x23d   :  { %v544_v52 = vperm.slane %v528_v51, 0  ;;  %v557_v53 = vperm.slane %v528_v51, 1 }
 0x23f   :  { %562 = vperm.xlu1 %1543, %v557_v53   ;;  %555 = vperm.xlu0 %1547, %v544_v52  }
 0x240   :  { %549 = vperm.xlu2 %1546, %v544_v52  }
 0x247   :  { %1544 = vset.pattern.permute.xlu1 %v1898_v49 }
 0x24f   :  { %301 = vperm.xlu1 %1544, %v290_v48  }
 0x257   :  { %568 = vperm.xlu1 %1544, %v557_v53  }
 0x28c   :  { %311 = vxpose.xlu1.b32.start [1/2] (short) (narrow) %v306_v40, 8  ;;  %v1485_v40 = vadd.f32 -1.0, %v1938_v27 }
 0x294   :  { %312 = vxpose.xlu1.b32.end [2/2] (short) (narrow) %v308_v50, 8 }
 0x29a   :  { %v550_v60 = vpop.permute.xlu2 %549 }
 0x29b   :  { %v614_v63 = vadd.f32 %v610_v58, %v550_v60 }
 0x29d   :  { %v296_v55 = vpop.permute.xlu1 %295  ;;  %v283_v57 = vpop.permute.xlu0 %282  ;;  %v618_v3 = vmul.f32 0.2, %v614_v63 }
 0x29f   :  { %v622_v8 = vmax.f32 %v614_v63, %v618_v3 }
 0x2a1   :  { %v1918_v13 = vadd.f32 %v622_v8, %v1908_v5 }
 0x2a3   :  { %v630_v16 = vsel %vm365_vm1, %v1918_v13, -inf }
 0x2b1   :  { %v563_v62 = vpop.permute.xlu1 %562  ;;  %v556_v6 = vpop.permute.xlu0 %555 }
 0x2b2   :  { %v616_v0 = vadd.f32 %v611_v59, %v563_v62  ;;  %v615_v9 = vadd.f32 %v610_v58, %v556_v6 }
 0x2b4   :  { %v620_v2 = vmul.f32 0.2, %v616_v0  ;;  %v619_v12 = vmul.f32 0.2, %v615_v9 }
 0x2b6   :  { %v624_v4 = vmax.f32 %v616_v0, %v620_v2  ;;  %v623_v15 = vmax.f32 %v615_v9, %v619_v12  ;;  %v1548_v2 = vpack.i.bf16 %v1874_v36, %v1872_v35 }
 0x2b8   :  { %v628_v7 = vadd.f32 %v624_v4, %v1908_v5  ;;  %v1926_v18 = vadd.f32 %v623_v15, %v1923_v17 }
 0x2ba   :  { %v636_v10 = vsel %vm365_vm1, %v628_v7, -inf  ;;  %v633_v19 = vsel %vm365_vm1, %v1926_v18, -inf }
 0x2bb   :  { %637 = vmax.xlane.f32.xlu0 %v636_v10 }
 0x2c1   :  { %v302_v20 = vpop.permute.xlu1 %301 }
 0x2c3   :  { %631 = vmax.xlane.f32.xlu0 %v630_v16 }
 0x2c9   :  { %v569_v21 = vpop.permute.xlu1 %568 }
 0x2ca   :  { %v617_v30 = vadd.f32 %v611_v59, %v569_v21 }
 0x2cb   :  { %634 = vmax.xlane.f32.xlu0 %v633_v19 }
 0x2cc   :  { %v621_v44 = vmul.f32 0.2, %v617_v30 }
 0x2ce   :  { %v625_v52 = vmax.f32 %v617_v30, %v621_v44 }
 0x2d0   :  { %v629_v60 = vadd.f32 %v625_v52, %v1923_v17 }
 0x2d2   :  { %v639_v63 = vsel %vm365_vm1, %v629_v60, -inf }
 0x2ee   :  { %288 = vperm.xlu1 %1544, %v277_v47   ;;  %v1944_v47 = vmul.f32 1e+09, %v1485_v40 }
 0x32e   :  { %v638_v22 = vpop.xlane.xlu0 %637 }
 0x32f   :  { %v644_v23 = vsub.f32 %v628_v7, %v638_v22 }
 0x330   :  { %v327_v24 = vpop.trf.xlu1 }
 0x331   :  { %v344_v26 = vrot.slane %v327_v24, 1  ;;  %v650_v31 = vmul.f32 1.442695, %v644_v23  ;;  %v345_v45 = vperm.slane %v327_v24, 0 }
 0x333   :  { %v346_v28 = vperm.slane %v344_v26, 0  ;;  %1579 = vpow2.f32 %v650_v31  ;;  %v349_v53 = vadd.f32 %v345_v45, %v283_v57 }
 0x335   :  { %v351_v37 = vadd.f32 %v346_v28, %v296_v55  ;;  %v352_v39 = vadd.f32 %v346_v28, %v302_v20  ;;  %v353_v58 = vmul.f32 0.2, %v349_v53 }
 0x336   :  { %v632_v23 = vpop.xlane.xlu0 %631 }
 0x337   :  { %v355_v41 = vmul.f32 0.2, %v351_v37  ;;  %v356_v42 = vmul.f32 0.2, %v352_v39  ;;  %v357_v0 = vmax.f32 %v349_v53, %v353_v58  ;;  %v642_v31 = vsub.f32 %v1918_v13, %v632_v23 }
 0x339   :  { %v360_v46 = vmax.f32 %v352_v39, %v356_v42  ;;  %v359_v48 = vmax.f32 %v351_v37, %v355_v41  ;;  %v1580_v56 = vpop.eup %1579  ;;  %v361_v57 = vadd.f32 %v357_v0, %v1944_v47  ;;  %v646_v42 = vmul.f32 1.442695, %v642_v31 }
 0x33a   :  { %v1951_v59 = vmul.f32 %v1580_v56, %v1905_v61 }
 0x33b   :  { %v364_v50 = vadd.f32 %v360_v46, %v1942_v43  ;;  %v363_v51 = vadd.f32 %v359_v48, %v1944_v47  ;;  %v366_v1 = vsel %vm365_vm1, %v361_v57, -inf }
 0x33c   :  { %v664_v62 = vsel %vm365_vm1, %v1951_v59, 0.0 }
 0x33d   :  { %v375_v54 = vsel %vm365_vm1, %v364_v50, -inf  ;;  %v372_v55 = vsel %vm365_vm1, %v363_v51, -inf }
 0x33e   :  { %376 = vmax.xlane.f32.xlu1 %v375_v54  ;;  %373 = vmax.xlane.f32.xlu2 %v372_v55  ;;  %v635_v44 = vpop.xlane.xlu0 %634 }
 0x33f   :  { %v643_v48 = vsub.f32 %v1926_v18, %v635_v44 }
 0x346   :  { %665 = vadd.xlane.f32.xlu1 %v664_v62  ;;  %640 = vmax.xlane.f32.xlu2 %v639_v63 }
 0x34e   :  { %367 = vmax.xlane.f32.xlu2 %v366_v1 }
 0x35f   :  { %1549 = vrot.lane.b32.xlu1 %v1548_v2, %s1679_s6 }
 0x360   :  { %v289_v3 = vpop.permute.xlu1 %288 }
 0x361   :  { %v350_v4 = vadd.f32 %v345_v45, %v289_v3 }
 0x363   :  { %v354_v6 = vmul.f32 0.2, %v350_v4 }
 0x365   :  { %v358_v7 = vmax.f32 %v350_v4, %v354_v6 }
 0x367   :  { %v362_v8 = vadd.f32 %v358_v7, %v1942_v43  ;;  %461 = vrot.lane.b32.xlu1 %v1996_v33, %s1679_s6 }
 0x369   :  { %v369_v9 = vsel %vm365_vm1, %v362_v8, -inf }
 0x36a   :  { %370 = vmax.xlane.f32.xlu2 %v369_v9 }
 0x3b1   :  { %v374_v10 = vpop.xlane.xlu2 %373  ;;  %v377_v12 = vpop.xlane.xlu1 %376 }
 0x3b2   :  { %v380_v14 = vsub.f32 %v363_v51, %v374_v10  ;;  %v381_v15 = vsub.f32 %v364_v50, %v377_v12  ;;  %v648_v51 = vmul.f32 1.442695, %v643_v48 }
 0x3b4   :  { %v386_v16 = vmul.f32 1.442695, %v380_v14  ;;  %v388_v19 = vmul.f32 1.442695, %v381_v15 }
 0x3b6   :  { %1581 = vpow2.f32 %v386_v16 }
 0x3b7   :  { %1583 = vpow2.f32 %v388_v19 }
 0x3b9   :  { %v641_v35 = vpop.xlane.xlu2 %640  ;;  %v666_v46 = vpop.xlane.xlu1 %665 }
 0x3ba   :  { %v645_v36 = vsub.f32 %v629_v60, %v641_v35 }
 0x3bc   :  { %v1582_v20 = vpop.eup %1581  ;;  %v652_v21 = vmul.f32 1.442695, %v645_v36 }
 0x3bd   :  { %v1584_v22 = vpop.eup %1583  ;;  %v1965_v24 = vmul.f32 %v1582_v20, %v1938_v27 }
 0x3be   :  { %1585 = vpow2.f32 %v652_v21  ;;  %v1968_v26 = vmul.f32 %v1584_v22, %v1933_v25 }
 0x3bf   :  { %v400_v28 = vsel %vm365_vm1, %v1965_v24, 0.0 }
 0x3c0   :  { %401 = vadd.xlane.f32.xlu2 %v400_v28  ;;  %v403_v29 = vsel %vm365_vm1, %v1968_v26, 0.0 }
 0x3c1   :  { %404 = vadd.xlane.f32.xlu0 %v403_v29  ;;  %v368_v30 = vpop.xlane.xlu2 %367 }
 0x3c2   :  { %v378_v37 = vsub.f32 %v361_v57, %v368_v30 }
 0x3c4   :  { %v1586_v39 = vpop.eup %1585  ;;  %v382_v40 = vmul.f32 1.442695, %v378_v37 }
 0x3c5   :  { %v1976_v41 = vmul.f32 %v1586_v39, %v1915_v11 }
 0x3c6   :  { %1587 = vpow2.f32 %v382_v40 }
 0x3c7   :  { %v667_v45 = vsel %vm365_vm1, %v1976_v41, 0.0  ;;  %1589 = vpow2.f32 %v646_v42 }
 0x3c8   :  { %668 = vadd.xlane.f32.xlu2 %v667_v45  ;;  %1591 = vpow2.f32 %v648_v51 }
 0x3cc   :  { %v1588_v50 = vpop.eup %1587 }
 0x3cd   :  { %v390_v13 = vmul.f32 %v1588_v50, %v1938_v27  ;;  %v1590_v53 = vpop.eup %1589 }
 0x3ce   :  { %v654_v58 = vmul.f32 %v1590_v53, %v1905_v61  ;;  %v1592_v60 = vpop.eup %1591 }
 0x3cf   :  { %v394_v52 = vsel %vm365_vm1, %v390_v13, 0.0  ;;  %v655_v62 = vmul.f32 %v1592_v60, %v1915_v11 }
 0x3d0   :  { %395 = vadd.xlane.f32.xlu2 %v394_v52  ;;  %v658_v18 = vsel %vm365_vm1, %v654_v58, 0.0 }
 0x3d1   :  { %v1550_v54 = vpop.permute.xlu1 %1549  ;;  %v661_v63 = vsel %vm365_vm1, %v655_v62, 0.0 }
 0x3d2   :  { %v1552_v55 = vunpack.i.h.bf16 %v1550_v54  ;;  %v1551_v56 = vunpack.i.l.bf16 %v1550_v54 }
 0x3d4   :  { %484 = vmatpush.msrb.mxu1 %v1551_v56  ;;  %748 = vmatpush.msra.mxu3 %v1552_v55 }
 0x3d5   :  { %1554 = vrot.lane.b32.xlu0 %v1553_v34, %s1679_s6  ;;  %v672_v34 = vmax.f32 %v666_v46, 1e-16 }
 0x3d8   :  { %659 = vadd.xlane.f32.xlu2 %v658_v18 }
 0x3dd   :  { %v371_v0 = vpop.xlane.xlu2 %370 }
 0x3de   :  { %v379_v57 = vsub.f32 %v362_v8, %v371_v0 }
 0x3e0   :  { %662 = vadd.xlane.f32.xlu2 %v661_v63  ;;  %v384_v1 = vmul.f32 1.442695, %v379_v57 }
 0x3e2   :  { %1593 = vpow2.f32 %v384_v1 }
 0x3e3   :  { %1595 = vrcp.f32 %v672_v34 }
 0x3e8   :  { %v1594_v2 = vpop.eup %1593 }
 0x3e9   :  { %v391_v3 = vmul.f32 %v1594_v2, %v1933_v25  ;;  %v1596_v15 = vpop.eup %1595 }
 0x3ea   :  { %v680_v20 = vmul.f32 %v1596_v15, %v1951_v59  ;;  %v817_v15 = vld [vmem:[%s2274_s13 + $0x30] sm:$0xff] }
 0x3eb   :  { %v397_v4 = vsel %vm365_vm1, %v391_v3, 0.0 }
 0x3ff   :  { %398 = vadd.xlane.f32.xlu0 %v397_v4 }
 0x433   :  { %v402_v32 = vpop.xlane.xlu2 %401 }
 0x434   :  { %v408_v7 = vmax.f32 %v402_v32, 1e-16  ;;  %v405_v8 = vpop.xlane.xlu0 %404 }
 0x435   :  { %v409_v9 = vmax.f32 %v405_v8, 1e-16 }
 0x436   :  { %1597 = vrcp.f32 %v408_v7 }
 0x43b   :  { %v669_v6 = vpop.xlane.xlu2 %668 }
 0x43c   :  { %v673_v12 = vmax.f32 %v669_v6, 1e-16  ;;  %v1598_v16 = vpop.eup %1597 }
 0x43d   :  { %v416_v21 = vmul.f32 %v1598_v16, %v1965_v24  ;;  %v1576_v24 = vld [vmem:[%s2272_s11] ss:$0 sm:$0xff]  ;;  %s1680_s11 = smov 32   ;;  %v816_v16 = vld [vmem:[%s2274_s13 + $0x28] sm:$0xff] }
 0x43e   :  { %725 = vrot.lane.b32.xlu2 %v1576_v24, %s1679_s6 }
 0x443   :  { %v396_v10 = vpop.xlane.xlu2 %395 }
 0x444   :  { %v406_v14 = vmax.f32 %v396_v10, 1e-16 }
 0x446   :  { %1599 = vrcp.f32 %v406_v14  ;;  %v818_v14 = vld [vmem:[%s2274_s13 + $0x38] sm:$0xff] }
 0x447   :  { %1601 = vrcp.f32 %v409_v9  ;;  %v1555_v19 = vpop.permute.xlu0 %1554 }
 0x448   :  { %1603 = vrcp.f32 %v673_v12  ;;  %v1557_v35 = vunpack.i.h.bf16 %v1555_v19  ;;  %v1556_v36 = vunpack.i.l.bf16 %v1555_v19  ;;  %v778_v19 = vld [vmem:[%s2273_s12 + $0x38] sm:$0xff] }
 0x449   :  { %794 = vmatpush.msra.mxu0 %v778_v19 }
 0x44a   :  { %485 = vmatpush.msrb.mxu1 %v1556_v36  ;;  %749 = vmatpush.msra.mxu3 %v1557_v35  ;;  %v814_v35 = vld [vmem:[%s2274_s13 + $0x18] sm:$0xff]  ;;  %v777_v36 = vld [vmem:[%s2273_s12 + $0x30] sm:$0xff] }
 0x44b   :  { %1495 = vmatmul.msk.f32.vlgmr.msrb.gmra.mxu1 %vm365_vm1, %v416_v21  ;;  %1499 = vmatmul.msk.f32.vlgmr.msra.gmra.mxu3 %vm365_vm1, %v680_v20  ;;  %v660_v22 = vpop.xlane.xlu2 %659  ;;  %v813_v20 = vld [vmem:[%s2274_s13 + $0x10] sm:$0xff]  ;;  %v776_v21 = vld [vmem:[%s2273_s12 + $0x28] sm:$0xff] }
 0x44c   :  { %v1600_v23 = vpop.eup %1599  ;;  %v670_v28 = vmax.f32 %v660_v22, 1e-16  ;;  %833 = vmatpush.msra.mxu1 %v818_v14  ;;  %v812_v22 = vld [vmem:[%s2274_s13 + $0x8] sm:$0xff]  ;;  %795 = vmatpush.msra.mxu0 %v777_v36 }
 0x44d   :  { %v1602_v29 = vpop.eup %1601  ;;  %v414_v30 = vmul.f32 %v1600_v23, %v390_v13  ;;  %v462_v13 = vpop.permute.xlu1 %461  ;;  %v811_v23 = vld [vmem:[%s2274_s13] sm:$0xff] }
 0x44e   :  { %v1604_v31 = vpop.eup %1603  ;;  %1605 = vrcp.f32 %v670_v28  ;;  %v417_v37 = vmul.f32 %v1602_v29, %v1968_v26  ;;  %834 = vmatpush.msra.mxu1 %v817_v15  ;;  %796 = vmatpush.msra.mxu0 %v776_v21  ;;  %v775_v28 = vld [vmem:[%s2273_s12 + $0x20] sm:$0xff]  ;;  %v774_v29 = vld [vmem:[%s2273_s12 + $0x18] sm:$0xff] }
 0x44f   :  { %1493 = vmatmul.msk.f32.vlgmr.msrb.gmra.mxu0 %vm365_vm1, %v414_v30  ;;  %v681_v59 = vmul.f32 %v1604_v31, %v1976_v41  ;;  %v773_v30 = vld [vmem:[%s2273_s12 + $0x10] sm:$0xff]  ;;  %v772_v31 = vld [vmem:[%s2273_s12 + $0x8] sm:$0xff] }
 0x450   :  { %835 = vmatpush.msra.mxu1 %v816_v16  ;;  %797 = vmatpush.msra.mxu0 %v775_v28 }
 0x452   :  { %798 = vmatpush.msra.mxu0 %v774_v29 }
 0x453   :  { %1496 = vmatmul.msk.f32.gmra.mxu1 %vm365_vm1, %v417_v37  ;;  %1500 = vmatmul.msk.f32.gmra.mxu3 %vm365_vm1, %v681_v59  ;;  %v663_v39 = vpop.xlane.xlu2 %662  ;;  %v771_v37 = vld [vmem:[%s2273_s12] sm:$0xff] }
 0x454   :  { %v1606_v40 = vpop.eup %1605  ;;  %v671_v42 = vmax.f32 %v663_v39, 1e-16  ;;  %799 = vmatpush.msra.mxu0 %v773_v30 }
 0x455   :  { %v678_v44 = vmul.f32 %v1606_v40, %v654_v58 }
 0x456   :  { %1607 = vrcp.f32 %v671_v42  ;;  %800 = vmatpush.msra.mxu0 %v772_v31 }
 0x457   :  { %1497 = vmatmul.msk.f32.vlgmr.msra.gmra.mxu2 %vm365_vm1, %v678_v44 }
 0x458   :  { %801 = vmatpush.msra.mxu0 %v771_v37 }
 0x45c   :  { %v1608_v26 = vpop.eup %1607 }
 0x45d   :  { %v679_v45 = vmul.f32 %v1608_v26, %v655_v62 }
 0x45f   :  { %1498 = vmatmul.msk.f32.gmra.mxu2 %vm365_vm1, %v679_v45 }
 0x472   :  { %v399_v41 = vpop.xlane.xlu0 %398 }
 0x473   :  { %v407_v46 = vmax.f32 %v399_v41, 1e-16 }
 0x475   :  { %1609 = vrcp.f32 %v407_v46 }
 0x47b   :  { %v1610_v48 = vpop.eup %1609 }
 0x47c   :  { %v415_v50 = vmul.f32 %v1610_v48, %v391_v3 }
 0x47e   :  { %1494 = vmatmul.msk.f32.gmra.mxu0 %vm365_vm1, %v415_v50 }
 0x498   :  { %v726_v55 = vpop.permute.xlu2 %725 }
 0x4c8   :  { %v487_v51 = vpop.f32.mrf.mxu1 }
 0x4c9   :  { %v488_v52 = vadd.f32 %v487_v51, %v462_v13 }
 0x4cb   :  { %v493_v53 = vmax.f32 %v488_v52, 0.0 }
 0x4cc   :  { %v445_v54 = vpop.f32.mrf.mxu0 }
 0x4cd   :  { %497 = vrot.lane.b32.xlu1 %v493_v53, %s1680_s11  ;;  %v446_v56 = vadd.f32 %v1996_v33, %v445_v54 }
 0x4ce   :  { %v751_v58 = vpop.f32.mrf.mxu3 }
 0x4cf   :  { %v451_v18 = vmax.f32 %v446_v56, 0.0  ;;  %v752_v60 = vadd.f32 %v751_v58, %v726_v55 }
 0x4d0   :  { %v490_v63 = vpop.f32.mrf.mxu1 }
 0x4d1   :  { %453 = vst.msk [vmem:[#allocation2] sm:$0xff] %vm92_vm0, %v451_v18  ;;  %v757_v62 = vmax.f32 %v752_v60, 0.0  ;;  %v491_v57 = vadd.f32 %v490_v63, %v462_v13 }
 0x4d3   :  { %v494_v4 = vmax.f32 %v491_v57, 0.0 }
 0x4d5   :  { %761 = vrot.lane.b32.xlu1 %v757_v62, %s1680_s11 }
 0x4d6   :  { %v754_v0 = vpop.f32.mrf.mxu3 }
 0x4d7   :  { %v755_v1 = vadd.f32 %v754_v0, %v726_v55 }
 0x4d9   :  { %v758_v2 = vmax.f32 %v755_v1, 0.0 }
 0x4da   :  { %v709_v3 = vpop.f32.mrf.mxu2 }
 0x4db   :  { %v710_v32 = vadd.f32 %v1576_v24, %v709_v3  ;;  %763 = vrot.lane.b32.xlu2 %v758_v2, %s1680_s11 }
 0x4dd   :  { %v715_v34 = vmax.f32 %v710_v32, 0.0  ;;  %499 = vrot.lane.b32.xlu1 %v494_v4, %s1680_s11 }
 0x4df   :  { %717 = vst.msk [vmem:[#allocation3] sm:$0xff] %vm92_vm0, %v715_v34 }
 0x4e2   :  { %v712_v6 = vpop.f32.mrf.mxu2 }
 0x4e3   :  { %v713_v7 = vadd.f32 %v1576_v24, %v712_v6 }
 0x4e5   :  { %v716_v8 = vmax.f32 %v713_v7, 0.0 }
 0x4e7   :  { %718 = vst.msk [vmem:[#allocation3 + $0x8] sm:$0xff] %vm92_vm0, %v716_v8 }
 0x4fb   :  { %v448_v9 = vpop.f32.mrf.mxu0 }
 0x4fc   :  { %v449_v10 = vadd.f32 %v1996_v33, %v448_v9  ;;  %v815_v33 = vld [vmem:[%s2274_s13 + $0x20] sm:$0xff]  ;;  %s1405_s13 = scalar_lea.vmem [#allocation5], %s1519_s22 }
 0x4fd   :  { %836 = vmatpush.msra.mxu1 %v815_v33 }
 0x4fe   :  { %v452_v12 = vmax.f32 %v449_v10, 0.0 }
 0x4ff   :  { %837 = vmatpush.msra.mxu1 %v814_v35 }
 0x500   :  { %454 = vst.msk [vmem:[#allocation2 + $0x8] sm:$0xff] %vm92_vm0, %v452_v12 }
 0x501   :  { %838 = vmatpush.msra.mxu1 %v813_v20 }
 0x503   :  { %839 = vmatpush.msra.mxu1 %v812_v22 }
 0x505   :  { %840 = vmatpush.msra.mxu1 %v811_v23 }
 0x535   :  { %v764_v59 = vpop.permute.xlu2 %763 }
 0x536   :  { %768 = vst.msk [vmem:[#allocation3 + $0x8] sm:$0xff] %vm503_vm2, %v764_v59 }
 0x53d   :  { %v770_v26 = vld [vmem:[#allocation3 + $0x8] sm:$0xff] }
 0x53f   :  { %v498_v24 = vpop.permute.xlu1 %497 }
 0x540   :  { %504 = vst.msk [vmem:[#allocation2] sm:$0xff] %vm503_vm2, %v498_v24 }
 0x547   :  { %v762_v39 = vpop.permute.xlu1 %761  ;;  %v809_v40 = vld [vmem:[#allocation2] sm:$0xff] }
 0x548   :  { %767 = vst.msk [vmem:[#allocation3] sm:$0xff] %vm503_vm2, %v762_v39  ;;  %1503 = vmatmul.msk.f32.vlgmr.msra.gmra.mxu1 %vm779_vm3, %v809_v40 }
 0x54f   :  { %v500_v42 = vpop.permute.xlu1 %499  ;;  %v769_v44 = vld [vmem:[#allocation3] sm:$0xff] }
 0x550   :  { %505 = vst.msk [vmem:[#allocation2 + $0x8] sm:$0xff] %vm503_vm2, %v500_v42  ;;  %1501 = vmatmul.msk.f32.vlgmr.msra.gmra.mxu0 %vm779_vm3, %v769_v44 }
 0x557   :  { %v810_v45 = vld [vmem:[#allocation2 + $0x8] sm:$0xff] }
 0x558   :  { %1502 = vmatmul.msk.f32.gmra.mxu0 %vm779_vm3, %v770_v26  ;;  %1504 = vmatmul.msk.f32.gmra.mxu1 %vm779_vm3, %v810_v45 }
 0x5c5   :  { %v2082_v41 = vpop.f32.mrf.mxu1 }
 0x5c6   :  { %850 = vrot.lane.b32.xlu1 %v2082_v41, %s1677_s30 }
 0x5cd   :  { %v2086_v46 = vpop.f32.mrf.mxu0 }
 0x5ce   :  { %1111 = vrot.lane.b32.xlu2 %v2086_v46, %s1677_s30  ;;  %1175 = vrot.lane.b32.xlu1 %v2082_v41, %s1678_s3 }
 0x5d5   :  { %v2092_v48 = vpop.f32.mrf.mxu0  ;;  %v2094_v50 = vpop.f32.mrf.mxu1 }
 0x5d6   :  { %916 = vrot.lane.b32.xlu2 %v2086_v46, %s1678_s3  ;;  %1052 = vmatpush.msrb.mxu2 %v2092_v48 }
 0x5d7   :  { %1113 = vrot.lane.b32.xlu1 %v2092_v48, %s1677_s30  ;;  %852 = vrot.lane.b32.xlu0 %v2094_v50, %s1677_s30  ;;  %s1421_s30 = scalar_lea.vmem [#allocation5], %s2235_s23 }
 0x5d8   :  { %1311 = vmatpush.msrb.mxu0 %v2094_v50  ;;  %1053 = vmatpush.msrb.mxu2 %v2086_v46 }
 0x5da   :  { %1312 = vmatpush.msrb.mxu0 %v2082_v41 }
 0x5df   :  { %918 = vrot.lane.b32.xlu1 %v2092_v48, %s1678_s3  ;;  %1177 = vrot.lane.b32.xlu0 %v2094_v50, %s1678_s3  ;;  %s1429_s3 = scalar_lea.vmem [#allocation5], %s2237_s10 }
 0x628   :  { %v1112_v13 = vpop.permute.xlu2 %1111 }
 0x629   :  { %1117 = vxpose.xlu1.b32.start [1/2] (short) (narrow) %v1112_v13, 8 }
 0x630   :  { %v917_v51 = vpop.permute.xlu2 %916 }
 0x631   :  { %922 = vxpose.xlu0.b32.start [1/2] (short) (narrow) %v917_v51, 8 }
 0x638   :  { %v851_v52 = vpop.permute.xlu1 %850 }
 0x639   :  { %856 = vxpose.xlu2.b32.start [1/2] (short) (narrow) %v851_v52, 8 }
 0x640   :  { %v1176_v53 = vpop.permute.xlu1 %1175 }
 0x649   :  { %v1114_v54 = vpop.permute.xlu1 %1113  ;;  %v853_v55 = vpop.permute.xlu0 %852 }
 0x64a   :  { %1118 = vxpose.xlu1.b32.end [2/2] (short) (narrow) %v1114_v54, 8  ;;  %857 = vxpose.xlu2.b32.end [2/2] (short) (narrow) %v853_v55, 8 }
 0x651   :  { %v919_v56 = vpop.permute.xlu1 %918  ;;  %v1178_v58 = vpop.permute.xlu0 %1177 }
 0x652   :  { %1181 = vxpose.xlu1.b32.start [1/2] (short) (narrow) %v1176_v53, 8  ;;  %923 = vxpose.xlu0.b32.end [2/2] (short) (narrow) %v919_v56, 8 }
 0x65a   :  { %1182 = vxpose.xlu1.b32.end [2/2] (short) (narrow) %v1178_v58, 8 }
 0x6ac   :  { %1561 = vset.pattern.permute.xlu2 %v1898_v49 }
 0x6ad   :  { %1560 = vset.pattern.permute.xlu1 %v1892_v38 }
 0x6b9   :  { %1558 = vset.pattern.permute.xlu0 %v1892_v38 }
 0x6db   :  { %v872_v18 = vpop.trf.xlu2 }
 0x6dc   :  { %v888_v60 = vperm.slane %v872_v18, 0  ;;  %v901_v62 = vperm.slane %v872_v18, 1 }
 0x6de   :  { %906 = vperm.xlu0 %1558, %v901_v62   ;;  %893 = vperm.xlu1 %1560, %v888_v60  }
 0x6df   :  { %899 = vperm.xlu2 %1561, %v888_v60  }
 0x6e6   :  { %v1133_v63 = vpop.trf.xlu1  ;;  %1563 = vset.pattern.permute.xlu1 %v1898_v49 }
 0x6e7   :  { %v1162_v0 = vperm.slane %v1133_v63, 1  ;;  %v1149_v57 = vperm.slane %v1133_v63, 0 }
 0x6e9   :  { %1167 = vperm.xlu0 %1558, %v1162_v0   ;;  %1173 = vperm.xlu2 %1561, %v1162_v0  }
 0x6ee   :  { %1160 = vperm.xlu1 %1563, %v1149_v57   ;;  %v938_v7 = vpop.trf.xlu0 }
 0x6ef   :  { %v955_v9 = vrot.slane %v938_v7, 1  ;;  %v956_v39 = vperm.slane %v938_v7, 0 }
 0x6f1   :  { %1559 = vset.pattern.permute.xlu0 %v1898_v49  ;;  %v957_v14 = vperm.slane %v955_v9, 0 }
 0x6f6   :  { %v1197_v1 = vpop.trf.xlu1 }
 0x6f7   :  { %v1214_v3 = vrot.slane %v1197_v1, 1  ;;  %v1215_v21 = vperm.slane %v1197_v1, 0 }
 0x6f9   :  { %912 = vperm.xlu0 %1559, %v901_v62   ;;  %v1216_v4 = vperm.slane %v1214_v3, 0 }
 0x701   :  { %1562 = vset.pattern.permute.xlu0 %v1892_v38 }
 0x709   :  { %1154 = vperm.xlu0 %1562, %v1149_v57  }
 0x711   :  { %1574 = vset.pattern.permute.xlu0 %v1898_v49 }
 0x739   :  { %v900_v2 = vpop.permute.xlu2 %899 }
 0x73a   :  { %v961_v53 = vadd.f32 %v956_v39, %v900_v2 }
 0x743   :  { %v1174_v32 = vpop.permute.xlu2 %1173 }
 0x744   :  { %v1222_v34 = vadd.f32 %v1216_v4, %v1174_v32 }
 0x746   :  { %v1226_v6 = vmul.f32 0.2, %v1222_v34 }
 0x748   :  { %v1230_v8 = vmax.f32 %v1222_v34, %v1226_v6 }
 0x74a   :  { %v1234_v10 = vadd.f32 %v1230_v8, %v1923_v17 }
 0x74c   :  { %v1244_v12 = vsel %vm365_vm1, %v1234_v10, -inf }
 0x74d   :  { %1245 = vmax.xlane.f32.xlu0 %v1244_v12 }
 0x750   :  { %v907_v38 = vpop.permute.xlu0 %906  ;;  %v894_v19 = vpop.permute.xlu1 %893 }
 0x751   :  { %v962_v15 = vadd.f32 %v957_v14, %v907_v38  ;;  %v960_v42 = vadd.f32 %v956_v39, %v894_v19 }
 0x753   :  { %v966_v16 = vmul.f32 0.2, %v962_v15  ;;  %v964_v13 = vmul.f32 0.2, %v960_v42 }
 0x755   :  { %v970_v49 = vmax.f32 %v962_v15, %v966_v16  ;;  %v968_v54 = vmax.f32 %v960_v42, %v964_v13 }
 0x757   :  { %v974_v33 = vadd.f32 %v970_v49, %v1944_v47  ;;  %v972_v56 = vadd.f32 %v968_v54, %v1944_v47 }
 0x759   :  { %v982_v35 = vsel %vm365_vm1, %v974_v33, -inf  ;;  %v976_v62 = vsel %vm365_vm1, %v972_v56, -inf }
 0x75a   :  { %983 = vmax.xlane.f32.xlu2 %v982_v35 }
 0x75b   :  { %v1168_v36 = vpop.permute.xlu0 %1167 }
 0x75c   :  { %v1221_v20 = vadd.f32 %v1216_v4, %v1168_v36 }
 0x75e   :  { %v1225_v22 = vmul.f32 0.2, %v1221_v20 }
 0x760   :  { %v1229_v23 = vmax.f32 %v1221_v20, %v1225_v22  ;;  %v1161_v28 = vpop.permute.xlu1 %1160 }
 0x761   :  { %v1220_v29 = vadd.f32 %v1215_v21, %v1161_v28 }
 0x762   :  { %v1233_v30 = vadd.f32 %v1229_v23, %v1908_v5 }
 0x763   :  { %v1224_v31 = vmul.f32 0.2, %v1220_v29 }
 0x764   :  { %v1241_v37 = vsel %vm365_vm1, %v1233_v30, -inf }
 0x765   :  { %v1228_v59 = vmax.f32 %v1220_v29, %v1224_v31  ;;  %1242 = vmax.xlane.f32.xlu1 %v1241_v37 }
 0x767   :  { %v2124_v24 = vadd.f32 %v1228_v59, %v1923_v17  ;;  %v965_v17 = vmul.f32 0.2, %v961_v53 }
 0x769   :  { %v1238_v26 = vsel %vm365_vm1, %v2124_v24, -inf  ;;  %v969_v18 = vmax.f32 %v961_v53, %v965_v17 }
 0x76b   :  { %v913_v40 = vpop.permute.xlu0 %912  ;;  %v2133_v0 = vadd.f32 %v969_v18, %v1942_v43 }
 0x76c   :  { %v963_v44 = vadd.f32 %v957_v14, %v913_v40  ;;  %v1564_v40 = vpack.i.bf16 %v2086_v46, %v2092_v48 }
 0x76d   :  { %1239 = vmax.xlane.f32.xlu1 %v1238_v26  ;;  %v979_v1 = vsel %vm365_vm1, %v2133_v0, -inf }
 0x76e   :  { %v967_v45 = vmul.f32 0.2, %v963_v44 }
 0x770   :  { %v971_v51 = vmax.f32 %v963_v44, %v967_v45 }
 0x772   :  { %v975_v52 = vadd.f32 %v971_v51, %v1942_v43 }
 0x774   :  { %v985_v55 = vsel %vm365_vm1, %v975_v52, -inf }
 0x775   :  { %986 = vmax.xlane.f32.xlu2 %v985_v55 }
 0x77b   :  { %v1155_v58 = vpop.permute.xlu0 %1154 }
 0x77c   :  { %v1219_v60 = vadd.f32 %v1215_v21, %v1155_v58 }
 0x77d   :  { %977 = vmax.xlane.f32.xlu2 %v976_v62 }
 0x77e   :  { %v1223_v63 = vmul.f32 0.2, %v1219_v60 }
 0x780   :  { %v1227_v57 = vmax.f32 %v1219_v60, %v1223_v63 }
 0x782   :  { %v1231_v2 = vadd.f32 %v1227_v57, %v1908_v5 }
 0x784   :  { %v1235_v3 = vsel %vm365_vm1, %v1231_v2, -inf }
 0x785   :  { %980 = vmax.xlane.f32.xlu2 %v979_v1 }
 0x78d   :  { %1236 = vmax.xlane.f32.xlu2 %v1235_v3 }
 0x7c0   :  { %v1246_v47 = vpop.xlane.xlu0 %1245 }
 0x7c1   :  { %v1250_v4 = vsub.f32 %v1234_v10, %v1246_v47 }
 0x7c3   :  { %v1257_v32 = vmul.f32 1.442695, %v1250_v4 }
 0x7c5   :  { %1611 = vpow2.f32 %v1257_v32 }
 0x7cb   :  { %v1612_v34 = vpop.eup %1611 }
 0x7cc   :  { %v2140_v6 = vmul.f32 %v1612_v34, %v1915_v11 }
 0x7cd   :  { %v984_v43 = vpop.xlane.xlu2 %983 }
 0x7ce   :  { %v990_v7 = vsub.f32 %v974_v33, %v984_v43  ;;  %v1272_v8 = vsel %vm365_vm1, %v2140_v6, 0.0 }
 0x7cf   :  { %1273 = vadd.xlane.f32.xlu0 %v1272_v8 }
 0x7d0   :  { %v996_v9 = vmul.f32 1.442695, %v990_v7 }
 0x7d2   :  { %1613 = vpow2.f32 %v996_v9 }
 0x7d8   :  { %v1614_v5 = vpop.eup %1613  ;;  %v1243_v12 = vpop.xlane.xlu1 %1242 }
 0x7d9   :  { %v1249_v14 = vsub.f32 %v1233_v30, %v1243_v12  ;;  %v2145_v38 = vmul.f32 %v1614_v5, %v1938_v27 }
 0x7db   :  { %v1255_v10 = vmul.f32 1.442695, %v1249_v14  ;;  %v1010_v15 = vsel %vm365_vm1, %v2145_v38, 0.0 }
 0x7dc   :  { %1011 = vadd.xlane.f32.xlu2 %v1010_v15 }
 0x7dd   :  { %1615 = vpow2.f32 %v1255_v10 }
 0x7e0   :  { %v1240_v59 = vpop.xlane.xlu1 %1239 }
 0x7e1   :  { %v1248_v44 = vsub.f32 %v2124_v24, %v1240_v59 }
 0x7e3   :  { %v1616_v16 = vpop.eup %1615  ;;  %v1253_v13 = vmul.f32 1.442695, %v1248_v44 }
 0x7e4   :  { %v2150_v49 = vmul.f32 %v1616_v16, %v1905_v61 }
 0x7e6   :  { %v1269_v33 = vsel %vm365_vm1, %v2150_v49, 0.0 }
 0x7e7   :  { %1270 = vadd.xlane.f32.xlu1 %v1269_v33 }
 0x7e8   :  { %v987_v19 = vpop.xlane.xlu2 %986 }
 0x7e9   :  { %v991_v35 = vsub.f32 %v975_v52, %v987_v19  ;;  %v1569_v52 = vpack.i.bf16 %v2082_v41, %v2094_v50 }
 0x7eb   :  { %v998_v36 = vmul.f32 1.442695, %v991_v35 }
 0x7ed   :  { %1617 = vpow2.f32 %v998_v36 }
 0x7f0   :  { %v978_v20 = vpop.xlane.xlu2 %977 }
 0x7f1   :  { %v988_v21 = vsub.f32 %v972_v56, %v978_v20 }
 0x7f3   :  { %v1618_v22 = vpop.eup %1617  ;;  %v992_v23 = vmul.f32 1.442695, %v988_v21 }
 0x7f4   :  { %v2155_v28 = vmul.f32 %v1618_v22, %v1933_v25 }
 0x7f5   :  { %1619 = vpow2.f32 %v992_v23 }
 0x7f6   :  { %v1013_v29 = vsel %vm365_vm1, %v2155_v28, 0.0 }
 0x7f7   :  { %1014 = vadd.xlane.f32.xlu2 %v1013_v29 }
 0x7f8   :  { %v981_v30 = vpop.xlane.xlu2 %980 }
 0x7f9   :  { %v989_v53 = vsub.f32 %v2133_v0, %v981_v30 }
 0x7fb   :  { %v1620_v31 = vpop.eup %1619 }
 0x7fc   :  { %v2160_v37 = vmul.f32 %v1620_v31, %v1938_v27 }
 0x7fe   :  { %v1004_v39 = vsel %vm365_vm1, %v2160_v37, 0.0 }
 0x7ff   :  { %1005 = vadd.xlane.f32.xlu0 %v1004_v39 }
 0x800   :  { %1565 = vrot.lane.b32.xlu1 %v1564_v40, %s1679_s6  ;;  %v1237_v42 = vpop.xlane.xlu2 %1236 }
 0x801   :  { %v1247_v26 = vsub.f32 %v1231_v2, %v1237_v42 }
 0x803   :  { %v1251_v45 = vmul.f32 1.442695, %v1247_v26 }
 0x805   :  { %1621 = vpow2.f32 %v1251_v45 }
 0x806   :  { %1623 = vpow2.f32 %v1253_v13 }
 0x80b   :  { %v1622_v27 = vpop.eup %1621 }
 0x80c   :  { %v2169_v51 = vmul.f32 %v1622_v27, %v1905_v61  ;;  %v1624_v48 = vpop.eup %1623  ;;  %v994_v61 = vmul.f32 1.442695, %v989_v53 }
 0x80d   :  { %v2177_v24 = vmul.f32 %v1624_v48, %v1915_v11  ;;  %v2190_v11 = vld [vmem:[%s2276_s15] ss:$0 sm:$0xff]  ;;  %s1415_s15 = scalar_lea.vmem [#allocation4], %s2228_s0 }
 0x80e   :  { %v1263_v46 = vsel %vm365_vm1, %v2169_v51, 0.0  ;;  %1625 = vpow2.f32 %v994_v61 }
 0x80f   :  { %1570 = vrot.lane.b32.xlu2 %v1569_v52, %s1679_s6  ;;  %1264 = vadd.xlane.f32.xlu0 %v1263_v46  ;;  %v1266_v54 = vsel %vm365_vm1, %v2177_v24, 0.0 }
 0x814   :  { %v1626_v55 = vpop.eup %1625 }
 0x815   :  { %v2183_v41 = vmul.f32 %v1626_v55, %v1933_v25 }
 0x817   :  { %1267 = vadd.xlane.f32.xlu0 %v1266_v54  ;;  %v1007_v50 = vsel %vm365_vm1, %v2183_v41, 0.0 }
 0x82a   :  { %1008 = vadd.xlane.f32.xlu1 %v1007_v50 }
 0x82b   :  { %1328 = vrot.lane.b32.xlu0 %v2190_v11, %s1679_s6 }
 0x842   :  { %v1274_v62 = vpop.xlane.xlu0 %1273 }
 0x843   :  { %v1278_v25 = vmax.f32 %v1274_v62, 1e-16 }
 0x84f   :  { %v1012_v17 = vpop.xlane.xlu2 %1011 }
 0x850   :  { %v1018_v58 = vmax.f32 %v1012_v17, 1e-16 }
 0x852   :  { %1627 = vrcp.f32 %v1018_v58 }
 0x858   :  { %v1628_v0 = vpop.eup %1627 }
 0x859   :  { %v1026_v7 = vmul.f32 %v1628_v0, %v2145_v38  ;;  %v1578_v38 = vld [vmem:[%s2275_s14] ss:$0 sm:$0xff]  ;;  %s1371_s14 = sld [smem:[#allocation9]] }
 0x85a   :  { %v1271_v56 = vpop.xlane.xlu1 %1270  ;;  %1069 = vrot.lane.b32.xlu2 %v1578_v38, %s1679_s6  ;;  %s1514_s6 = sld [smem:[#allocation9 + $0x1]] }
 0x85b   :  { %v1277_v18 = vmax.f32 %v1271_v56, 1e-16 }
 0x85d   :  { %1629 = vrcp.f32 %v1277_v18 }
 0x85e   :  { %1631 = vrcp.f32 %v1278_v25 }
 0x85f   :  { %s1374_s2 = scalar_lea.vmem [#allocation4], %s1371_s14  ;;  %s1423_s14 = scalar_lea.vmem [#allocation4], %s2230_s19 }
 0x860   :  { %s1383_s17 = scalar_lea.vmem [#allocation4], %s1514_s6  ;;  %s1431_s6 = scalar_lea.vmem [#allocation4], %s2239_s24 }
 0x863   :  { %v1630_v2 = vpop.eup %1629 }
 0x864   :  { %v1285_v8 = vmul.f32 %v1630_v2, %v2150_v49  ;;  %v1632_v9 = vpop.eup %1631 }
 0x865   :  { %v1286_v15 = vmul.f32 %v1632_v9, %v2140_v6 }
 0x86a   :  { %v1015_v60 = vpop.xlane.xlu2 %1014 }
 0x86b   :  { %v1019_v63 = vmax.f32 %v1015_v60, 1e-16 }
 0x86d   :  { %1633 = vrcp.f32 %v1019_v63 }
 0x872   :  { %v1566_v57 = vpop.permute.xlu1 %1565  ;;  %v1571_v1 = vpop.permute.xlu2 %1570 }
 0x873   :  { %v1567_v3 = vunpack.i.l.bf16 %v1566_v57  ;;  %v1572_v47 = vunpack.i.l.bf16 %v1571_v1  ;;  %v1006_v4 = vpop.xlane.xlu0 %1005  ;;  %v1568_v34 = vunpack.i.h.bf16 %v1566_v57  ;;  %v1573_v43 = vunpack.i.h.bf16 %v1571_v1  ;;  %v1634_v5 = vpop.eup %1633 }
 0x874   :  { %v1016_v32 = vmax.f32 %v1006_v4, 1e-16  ;;  %v1027_v10 = vmul.f32 %v1634_v5, %v2155_v28 }
 0x875   :  { %1092 = vmatpush.msrb.mxu3 %v1567_v3  ;;  %1351 = vmatpush.msrb.mxu1 %v1572_v47 }
 0x876   :  { %1635 = vrcp.f32 %v1016_v32 }
 0x877   :  { %1093 = vmatpush.msrb.mxu3 %v1568_v34  ;;  %1352 = vmatpush.msrb.mxu1 %v1573_v43 }
 0x878   :  { %1507 = vmatmul.msk.f32.vlgmr.msrb.gmra.mxu3 %vm365_vm1, %v1026_v7  ;;  %1511 = vmatmul.msk.f32.vlgmr.msrb.gmra.mxu1 %vm365_vm1, %v1285_v8 }
 0x87c   :  { %v1636_v12 = vpop.eup %1635 }
 0x87d   :  { %v1024_v14 = vmul.f32 %v1636_v12, %v2160_v37 }
 0x87f   :  { %1505 = vmatmul.msk.f32.vlgmr.msrb.gmra.mxu2 %vm365_vm1, %v1024_v14 }
 0x880   :  { %1508 = vmatmul.msk.f32.gmra.mxu3 %vm365_vm1, %v1027_v10  ;;  %1512 = vmatmul.msk.f32.gmra.mxu1 %vm365_vm1, %v1286_v15 }
 0x882   :  { %v1265_v16 = vpop.xlane.xlu0 %1264 }
 0x883   :  { %v1275_v49 = vmax.f32 %v1265_v16, 1e-16 }
 0x885   :  { %1637 = vrcp.f32 %v1275_v49 }
 0x88a   :  { %v1268_v33 = vpop.xlane.xlu0 %1267 }
 0x88b   :  { %v1638_v19 = vpop.eup %1637  ;;  %v1276_v35 = vmax.f32 %v1268_v33, 1e-16 }
 0x88c   :  { %v1283_v6 = vmul.f32 %v1638_v19, %v2169_v51 }
 0x88d   :  { %1639 = vrcp.f32 %v1276_v35 }
 0x88e   :  { %1509 = vmatmul.msk.f32.vlgmr.msrb.gmra.mxu0 %vm365_vm1, %v1283_v6 }
 0x893   :  { %v1640_v36 = vpop.eup %1639 }
 0x894   :  { %v1284_v20 = vmul.f32 %v1640_v36, %v2177_v24 }
 0x896   :  { %1510 = vmatmul.msk.f32.gmra.mxu0 %vm365_vm1, %v1284_v20 }
 0x89d   :  { %v1009_v21 = vpop.xlane.xlu1 %1008  ;;  %v1329_v59 = vpop.permute.xlu0 %1328 }
 0x89e   :  { %v1017_v22 = vmax.f32 %v1009_v21, 1e-16 }
 0x8a0   :  { %1641 = vrcp.f32 %v1017_v22 }
 0x8a6   :  { %v1642_v23 = vpop.eup %1641 }
 0x8a7   :  { %v1025_v28 = vmul.f32 %v1642_v23, %v2183_v41 }
 0x8a9   :  { %1506 = vmatmul.msk.f32.gmra.mxu2 %vm365_vm1, %v1025_v28 }
 0x8b4   :  { %v1070_v30 = vpop.permute.xlu2 %1069 }
 0x8f5   :  { %v1354_v29 = vpop.f32.mrf.mxu1 }
 0x8f6   :  { %v1355_v27 = vadd.f32 %v1354_v29, %v1329_v59 }
 0x8fb   :  { %v1095_v31 = vpop.f32.mrf.mxu3 }
 0x8fc   :  { %v1096_v37 = vadd.f32 %v1095_v31, %v1070_v30 }
 0x8fd   :  { %v1357_v39 = vpop.f32.mrf.mxu1 }
 0x8fe   :  { %v1358_v40 = vadd.f32 %v1357_v39, %v1329_v59  ;;  %1103 = vrot.lane.b32.xlu2 %v1096_v37, %s1680_s11 }
 0x900   :  { %1364 = vrot.lane.b32.xlu0 %v1358_v40, %s1680_s11 }
 0x902   :  { %v1055_v42 = vpop.f32.mrf.mxu2 }
 0x903   :  { %v1056_v44 = vadd.f32 %v1578_v38, %v1055_v42  ;;  %v1098_v26 = vpop.f32.mrf.mxu3 }
 0x904   :  { %v1099_v45 = vadd.f32 %v1098_v26, %v1070_v30 }
 0x905   :  { %1061 = vst.msk [vmem:[#allocation4] sm:$0xff] %vm92_vm0, %v1056_v44 }
 0x906   :  { %1105 = vrot.lane.b32.xlu2 %v1099_v45, %s1680_s11 }
 0x90b   :  { %v1314_v13 = vpop.f32.mrf.mxu0 }
 0x90c   :  { %v1315_v51 = vadd.f32 %v2190_v11, %v1314_v13 }
 0x90e   :  { %1320 = vst.msk [vmem:[#allocation5] sm:$0xff] %vm92_vm0, %v1315_v51  ;;  %1362 = vrot.lane.b32.xlu2 %v1355_v27, %s1680_s11  ;;  %s2226_s11 = sld [smem:[#allocation9 + $0x4]] }
 0x913   :  { %v1317_v52 = vpop.f32.mrf.mxu0 }
 0x914   :  { %v1318_v46 = vadd.f32 %v2190_v11, %v1317_v52  ;;  %s1407_s12 = scalar_lea.vmem [#allocation4], %s2226_s11 }
 0x916   :  { %1321 = vst.msk [vmem:[#allocation5 + $0x8] sm:$0xff] %vm92_vm0, %v1318_v46 }
 0x92c   :  { %v1058_v48 = vpop.f32.mrf.mxu2 }
 0x92d   :  { %v1059_v24 = vadd.f32 %v1578_v38, %v1058_v48 }
 0x92f   :  { %1062 = vst.msk [vmem:[#allocation4 + $0x8] sm:$0xff] %vm92_vm0, %v1059_v24 }
 0x958   :  { %v1104_v53 = vpop.permute.xlu2 %1103 }
 0x959   :  { %1109 = vst.msk [vmem:[#allocation4] sm:$0xff] %vm503_vm2, %v1104_v53 }
 0x960   :  { %v1106_v54 = vpop.permute.xlu2 %1105 }
 0x961   :  { %1110 = vst.msk [vmem:[#allocation4 + $0x8] sm:$0xff] %vm503_vm2, %v1106_v54 }
 0x968   :  { %v1363_v61 = vpop.permute.xlu2 %1362  ;;  %v1375_v41 = vld [vmem:[%s1374_s2] sm:$0x1] }
 0x969   :  { %1368 = vst.msk [vmem:[#allocation5] sm:$0xff] %vm503_vm2, %v1363_v61  ;;  %v1384_v50 = vld [vmem:[%s1383_s17] sm:$0x1] }
 0x96a   :  { %v1392_v17 = vld [vmem:[%s1391_s4] sm:$0x1] }
 0x96b   :  { %v1400_v11 = vld [vmem:[%s1399_s25] sm:$0x1] }
 0x96c   :  { %v1408_v1 = vld [vmem:[%s1407_s12] sm:$0x1] }
 0x96d   :  { %v1416_v47 = vld [vmem:[%s1415_s15] sm:$0x1] }
 0x96e   :  { %v1424_v34 = vld [vmem:[%s1423_s14] sm:$0x1] }
 0x96f   :  { %v1432_v7 = vld [vmem:[%s1431_s6] sm:$0x1] }
 0x972   :  { %v1365_v55 = vpop.permute.xlu0 %1364 }
 0x973   :  { %1369 = vst.msk [vmem:[#allocation5 + $0x8] sm:$0xff] %vm503_vm2, %v1365_v55 }
 0x97a   :  { %v1373_v56 = vld [vmem:[%s1372_s26] sm:$0x1] }
 0x97b   :  { %v1382_v58 = vld [vmem:[%s1381_s27] sm:$0x1]  ;;  %v1376_v60 = vmul.f32 %v1375_v41, %v1373_v56 }
 0x97c   :  { %v1390_v18 = vld [vmem:[%s1389_s8] sm:$0x1]  ;;  %v1385_v62 = vmul.f32 %v1384_v50, %v1382_v58 }
 0x97d   :  { %v1393_v25 = vmul.f32 %v1392_v17, %v1390_v18  ;;  %v1398_v63 = vld [vmem:[%s1397_s9] sm:$0x1]  ;;  %1378 = vst.msk [vmem:[#allocation6] sm:$0x1] %vm1377_vm4, %v1376_v60 }
 0x97e   :  { %v1406_v0 = vld [vmem:[%s1405_s13] sm:$0x1]  ;;  %v1401_v2 = vmul.f32 %v1400_v11, %v1398_v63  ;;  %1386 = vst.msk [vmem:[#allocation6 + $0x1] sm:$0x1] %vm1377_vm4, %v1385_v62 }
 0x97f   :  { %v1414_v57 = vld [vmem:[%s1413_s28] sm:$0x1]  ;;  %v1409_v4 = vmul.f32 %v1408_v1, %v1406_v0  ;;  %1394 = vst.msk [vmem:[#allocation6 + $0x2] sm:$0x1] %vm1377_vm4, %v1393_v25 }
 0x980   :  { %v1422_v3 = vld [vmem:[%s1421_s30] sm:$0x1]  ;;  %v1417_v43 = vmul.f32 %v1416_v47, %v1414_v57  ;;  %1402 = vst.msk [vmem:[#allocation6 + $0x3] sm:$0x1] %vm1377_vm4, %v1401_v2 }
 0x981   :  { %v1430_v32 = vld [vmem:[%s1429_s3] sm:$0x1]  ;;  %v1425_v8 = vmul.f32 %v1424_v34, %v1422_v3  ;;  %1410 = vst.msk [vmem:[#allocation6 + $0x4] sm:$0x1] %vm1377_vm4, %v1409_v4 }
 0x982   :  { %v1433_v9 = vmul.f32 %v1432_v7, %v1430_v32  ;;  %1418 = vst.msk [vmem:[#allocation6 + $0x5] sm:$0x1] %vm1377_vm4, %v1417_v43 }
 0x983   :  { %1426 = vst.msk [vmem:[#allocation6 + $0x6] sm:$0x1] %vm1377_vm4, %v1425_v8 }
 0x984   :  { %1434 = vst.msk [vmem:[#allocation6 + $0x7] sm:$0x1] %vm1377_vm4, %v1433_v9 }
 0x98b   :  { %v1435_v5 = vld [vmem:[#allocation6] sm:$0xff] }
 0x98c   :  { %v1436_v12 = vsel %vm779_vm3, %v1435_v5, 0.0 }
 0x98d   :  { %1437 = vadd.xlane.f32.xlu2 %v1436_v12 }
 0xa00   :  { %v1438_v14 = vpop.xlane.xlu2 %1437 }
 0xa01   :  { %v1527_v10 = vmul.f32 -1.442695, %v1438_v14 }
 0xa03   :  { %1643 = vpow2.f32 %v1527_v10 }
 0xa09   :  { %v1644_v15 = vpop.eup %1643 }
 0xa0a   :  { %v1442_v38 = vadd.f32 1.0, %v1644_v15 }
 0xa0c   :  { %1645 = vrcp.f32 %v1442_v38  ;;  %v1454_v19 = vand.u32 2147483648, %v1442_v38  ;;  %v1452_v6 = vand.u32 2147483647, %v1442_v38  ;;  %vm1448_vm6 = vweird.f32 %v1442_v38 }
 0xa0e   :  { %v1455_v20 = vor.u32 1.1754944e-38, %v1454_v19  ;;  %vm1453_vm8 = vcmp.eq.f32.partialorder %v1452_v6, 8.507059e+37 }
 0xa12   :  { %v1646_v16 = vpop.eup %1645 }
 0xa13   :  { %v1444_v49 = vmul.f32 %v1646_v16, %v1442_v38  ;;  %vm1449_vm5 = vweird.f32 %v1646_v16 }
 0xa14   :  { %vm1450_vm7 = vmor %vm1448_vm6, %vm1449_vm5 }
 0xa15   :  { %v1445_v33 = vsub.f32 1.0, %v1444_v49 }
 0xa17   :  { %v1446_v35 = vmul.f32 %v1646_v16, %v1445_v33 }
 0xa19   :  { %v1447_v36 = vadd.f32 %v1646_v16, %v1446_v35 }
 0xa1b   :  { %v1451_v21 = vsel %vm1450_vm7, %v1646_v16, %v1447_v36 }
 0xa1c   :  { %v1456_v22 = vsel %vm1453_vm8, %v1455_v20, %v1451_v21 }
 0xa1d   :  { %1458 = vst [vmem:[%s2279_s18] sm:$0xff] %v1456_v22 }
 0xa1e   :  { %1463 = vsyncpa [#allocation8], 1 }
 0xa1f   :  { %1464 = vsyncpa [#allocation10], 1 }

</bundles_post_ra>
